<compile_context>
chip_gen: v7x
topology: tpu7x:2x2x1
jax: 0.10.0
libtpu: 0.0.40
codegen_flags: <defaults>
</compile_context>

<pallas_src>
import functools

import jax
import jax.numpy as jnp
from jax.experimental import pallas as pl
from jax.experimental.pallas import tpu as pltpu

HIDDEN = 200  # fixed by the module (fc1 -> 200)


def _round_up(x, m):
    return (x + m - 1) // m * m


def _vmem_capacity_bytes():
    try:
        info = pltpu.get_tpu_info()
        return int(getattr(info, "vmem_capacity_bytes", 64 * 1024 * 1024))
    except Exception:
        return 64 * 1024 * 1024   # conservative (v7x-sized) fallback


def _pick_vocab_tile(Hp, itemsize, v128):
    """Largest lane-dense vocab tile whose double-buffered W2 stream fits a
    per-generation VMEM budget (amortizes the fixed per-grid-step cost)."""
    vmem = _vmem_capacity_bytes()
    # Keep the W2 double-buffer <= min(vmem/4, 24 MiB): leaves room for the
    # out/b2 double buffers, the resident h, and compiler scratch on v7x.
    budget = min(vmem // 4, 24 * 1024 * 1024)
    tn_cap = max(128, (budget // (2 * Hp * itemsize)) // 128 * 128)
    target = 8192 if itemsize <= 2 else 4096
    return min(target, tn_cap, v128)


# ---------------------------------------------------------------------------
# Kernel 1: embedding gather (manual DMA from HBM) + fc1 + ReLU.
# ---------------------------------------------------------------------------
def cbow_fc1_kernel(idx_ref,      # SMEM (C*B,) int32, slot-major (scalar prefetch)
                    emb_hbm,      # HBM  (V, D) embedding table (memory_space=ANY)
                    w1_ref,       # VMEM (C*D, Hp)
                    b1_ref,       # VMEM (1, Hp) f32
                    h_ref,        # VMEM out (B, Hp), stored in the W2 dtype
                    g_ref,        # VMEM scratch (C*B, D) gathered rows
                    sem,          # DMA semaphore (1,) shared by all row copies
                    *, B, C, D):
    # Gather the needed embedding rows.  All copies share one semaphore:
    # start them all, then drain (every row copy has the same size).
    # TODO(synk): dedup repeated token indices to cut DMA descriptor count.
    copies = []
    for k in range(C * B):
        cp = pltpu.make_async_copy(
            emb_hbm.at[pl.ds(idx_ref[k], 1), :],   # one (1, D) row from HBM
            g_ref.at[pl.ds(k, 1), :],
            sem.at[0])
        cp.start()
        copies.append(cp)
    for cp in copies:
        cp.wait()

    Hp = w1_ref.shape[1]
    # fc1 as a sum over context slots: avoids the (B*C, D)->(B, C*D) relayout.
    acc = jnp.zeros((B, Hp), jnp.float32)
    for c in range(C):
        e_c = g_ref[pl.ds(c * B, B), :].astype(w1_ref.dtype)   # (B, D)
        w_c = w1_ref[pl.ds(c * D, D), :]                       # (D, Hp)
        acc = acc + jnp.dot(e_c, w_c, preferred_element_type=jnp.float32)
    h_ref[...] = jnp.maximum(acc + b1_ref[...], 0.0).astype(h_ref.dtype)


# ---------------------------------------------------------------------------
# Kernel 2: vocab-tiled streamed fc2:  out[:, j] = h @ W2[:, j] + b2[j]
# ---------------------------------------------------------------------------
def cbow_fc2_kernel(h_ref,     # VMEM (B, Hp)  resident, same dtype as W2
                    w2_ref,    # VMEM (Hp, TN) vocab tile j
                    b2_ref,    # VMEM (1, TN)  f32
                    out_ref):  # VMEM (B, TN)  f32
    out_ref[...] = (jnp.dot(h_ref[...], w2_ref[...],
                            preferred_element_type=jnp.float32)
                    + b2_ref[...])


def cbow_forward(x, emb, w1, b1, w2, b2, *, tn=None, param_dtype=jnp.bfloat16):
    """CBOW forward.

    x   : (B, C) int token indices
    emb : (V, D) embedding table
    w1  : (C*D, H) fc1 weight, stored as PyTorch weight.T
    b1  : (H,)
    w2  : (H, V)  fc2 weight, stored as PyTorch weight.T
    b2  : (V,)
    tn  : vocab tile override (auto-sized from dtype + VMEM if None)
    param_dtype : storage dtype for emb/w1/w2 (default bf16, f32 accumulation);
                  None keeps the incoming dtype (e.g. exact f32).
    Returns logits (B, V) float32.
    """
    B, C = x.shape
    V, D = emb.shape
    CD, H = w1.shape
    assert CD == C * D and w2.shape == (H, V)
    assert b1.shape == (H,) and b2.shape == (V,)

    if param_dtype is not None:
        emb = emb.astype(param_dtype)
        w1 = w1.astype(param_dtype)
        w2 = w2.astype(param_dtype)

    # Pad batch to a sublane multiple: unmasked output stores.  (For real
    # throughput, stack many examples so B ~ 128-256 and the W2 stream is
    # amortized; that is a caller-side decision.)
    Bp = _round_up(max(B, 1), 8)
    if Bp != B:
        x = jnp.pad(x, ((0, Bp - B), (0, 0)))   # padded rows use (valid) index 0

    # Pad hidden 200 -> 256: no masked lanes on fc1 out / fc2 contraction.
    Hp = _round_up(H, 128)
    w1p = jnp.pad(w1, ((0, 0), (0, Hp - H)))
    b1p = jnp.pad(b1.astype(jnp.float32), (0, Hp - H))
    w2p = jnp.pad(w2, ((0, Hp - H), (0, 0)))

    # Lane-dense vocab tile, auto-sized from dtype + per-generation VMEM.
    itemsize = jnp.dtype(w2p.dtype).itemsize
    v128 = _round_up(V, 128)
    TN = tn if tn is not None else _pick_vocab_tile(Hp, itemsize, v128)
    TN = min(_round_up(TN, 128), v128)
    Vp = _round_up(V, TN)
    w2p = jnp.pad(w2p, ((0, 0), (0, Vp - V)))
    b2p = jnp.pad(b2.astype(jnp.float32), (0, Vp - V))

    # Indices -> SMEM scalar prefetch, slot-major so slot c occupies rows
    # [c*Bp, (c+1)*Bp) of the gather scratch.  Clip to avoid OOB DMA (PyTorch
    # nn.Embedding would raise; upstream must guarantee validity).
    idx = jnp.clip(x.astype(jnp.int32), 0, V - 1).T.reshape(-1)   # (C*Bp,)

    # ---- kernel 1: gather + fc1 + ReLU -> h (Bp, Hp), stored in W2 dtype ----
    fc1 = functools.partial(cbow_fc1_kernel, B=Bp, C=C, D=D)
    h = pl.pallas_call(
        fc1,
        out_shape=jax.ShapeDtypeStruct((Bp, Hp), w2p.dtype),
        grid_spec=pltpu.PrefetchScalarGridSpec(
            num_scalar_prefetch=1,
            grid=(1,),
            in_specs=[
                pl.BlockSpec(memory_space=pl.ANY),               # emb stays in HBM
                pl.BlockSpec((CD, Hp), lambda i, _idx: (0, 0)),  # w1
                pl.BlockSpec((1, Hp), lambda i, _idx: (0, 0)),   # b1
            ],
            out_specs=pl.BlockSpec((Bp, Hp), lambda i, _idx: (0, 0)),
            scratch_shapes=[
                pltpu.VMEM((C * Bp, D), emb.dtype),   # gathered embedding rows
                pltpu.SemaphoreType.DMA((1,)),        # single shared DMA semaphore
            ],
        ),
        compiler_params=pltpu.CompilerParams(
            dimension_semantics=("arbitrary",),
        ),
    )(idx, emb, w1p, b1p.reshape(1, Hp))

    # ---- kernel 2: streamed fc2 over vocab tiles (megacore-parallel) ----
    grid_n = Vp // TN
    vmem_needed = (2 * Hp * TN * itemsize            # double-buffered W2 tiles
                   + 2 * (Bp + 1) * TN * 4           # double-buffered out + b2
                   + Bp * Hp * itemsize)             # resident h
    vmem_cap = _vmem_capacity_bytes()
    vmem_limit = max(32 * 1024 * 1024, vmem_needed + 8 * 1024 * 1024)
    vmem_limit = int(min(vmem_limit, vmem_cap - 8 * 1024 * 1024))

    out = pl.pallas_call(
        cbow_fc2_kernel,
        out_shape=jax.ShapeDtypeStruct((Bp, Vp), jnp.float32),
        grid_spec=pltpu.PrefetchScalarGridSpec(
            num_scalar_prefetch=0,
            grid=(grid_n,),
            in_specs=[
                pl.BlockSpec((Bp, Hp), lambda j: (0, 0)),   # h (resident)
                pl.BlockSpec((Hp, TN), lambda j: (0, j)),   # w2 vocab tile
                pl.BlockSpec((1, TN), lambda j: (0, j)),    # b2 vocab tile
            ],
            out_specs=pl.BlockSpec((Bp, TN), lambda j: (0, j)),
        ),
        compiler_params=pltpu.CompilerParams(
            dimension_semantics=("parallel",),   # independent tiles: v7x megacore
            vmem_limit_bytes=vmem_limit,
        ),
    )(h, w2p, b2p.reshape(1, Vp))
    return out[:B, :V]


def cbow_reference(x, emb, w1, b1, w2, b2):
    B, C = x.shape
    embed = jnp.take(emb, x, axis=0).reshape(B, -1)
    h = jnp.maximum(embed @ w1 + b1, 0.0)
    return h @ w2 + b2


if __name__ == "__main__":
    # Small shapes consistent with the module's forward.
    vocab_size = 64
    embedding_dim = 32
    context_size = 4
    batch = 8

    key = jax.random.PRNGKey(0)
    k_idx, k_emb, k_w1, k_b1, k_w2, k_b2 = jax.random.split(key, 6)

    # Deterministic synthetic parameters (shapes from __init__).
    emb = jax.random.normal(k_emb, (vocab_size, embedding_dim), jnp.float32)
    # Linear weights stored as (in, out) == PyTorch weight.T
    w1 = jax.random.uniform(k_w1, (context_size * embedding_dim, HIDDEN),
                            jnp.float32, -0.1, 0.1)
    b1 = jax.random.uniform(k_b1, (HIDDEN,), jnp.float32, -0.1, 0.1)
    w2 = jax.random.uniform(k_w2, (HIDDEN, vocab_size), jnp.float32, -0.1, 0.1)
    b2 = jax.random.uniform(k_b2, (vocab_size,), jnp.float32, -0.1, 0.1)

    # Context word indices (B, C).
    x = jax.random.randint(k_idx, (batch, context_size), 0, vocab_size, jnp.int32)

    ref = cbow_reference(x, emb, w1, b1, w2, b2)

    # f32 parameters: exact match to the reference.
    out = cbow_forward(x, emb, w1, b1, w2, b2, param_dtype=jnp.float32)
    out = jax.block_until_ready(out)
    assert out.shape == (batch, vocab_size)
    assert jnp.allclose(out, ref, atol=1e-4, rtol=1e-4), "f32 mismatch vs reference"

    # Default bf16 parameter storage (f32 accumulation): halves the W2 stream.
    out_bf16 = cbow_forward(x, emb, w1, b1, w2, b2)
    out_bf16 = jax.block_until_ready(out_bf16)
    assert jnp.allclose(out_bf16, ref, atol=5e-2, rtol=5e-2), "bf16 mismatch vs reference"

    # Batch not a multiple of 8: exercises the sublane padding path.
    x_odd = x[:5]
    ref_odd = cbow_reference(x_odd, emb, w1, b1, w2, b2)
    out_odd = cbow_forward(x_odd, emb, w1, b1, w2, b2, param_dtype=jnp.float32)
    out_odd = jax.block_until_ready(out_odd)
    assert out_odd.shape == (5, vocab_size)
    assert jnp.allclose(out_odd, ref_odd, atol=1e-4, rtol=1e-4), "padded-batch mismatch"

    print("KERNEL_OK")
</pallas_src>

<mosaic_0001>
module attributes {stable_mosaic.version = 11 : i64} {
  func.func @cbow_fc1_kernel(%arg0: i32, %arg1: memref<32xi32, #tpu.memory_space<smem>>, %arg2: memref<64x32xf32, #tpu.memory_space<any>>, %arg3: memref<128x256xf32, #tpu.memory_space<vmem>>, %arg4: memref<1x256xf32, #tpu.memory_space<vmem>>, %arg5: memref<8x256xf32, #tpu.memory_space<vmem>>, %arg6: memref<32x32xf32, #tpu.memory_space<vmem>>, %arg7: memref<1x!tpu.dma_semaphore, #tpu.memory_space<semaphore_mem>>) attributes {dimension_semantics = [#tpu.dimension_semantics<arbitrary>], iteration_bounds = array<i64: 1>, scalar_prefetch = 1 : i64, scratch_operands = 2 : i64, tpu.core_type = #tpu.core_type<tc>, window_params = [{}, {pipeline_mode = #tpu.pipeline_mode<synchronous>, transform_indices = @transform_1, window_bounds = array<i64: 128, 256>}, {pipeline_mode = #tpu.pipeline_mode<synchronous>, transform_indices = @transform_2, window_bounds = array<i64: 1, 256>}, {pipeline_mode = #tpu.pipeline_mode<synchronous>, transform_indices = @transform_3, window_bounds = array<i64: 8, 256>}]} {
    %c0 = arith.constant 0 : index
    %0 = memref.load %arg1[%c0] : memref<32xi32, #tpu.memory_space<smem>>
    %c0_i32 = arith.constant 0 : i32
    %c0_i32_0 = arith.constant 0 : i32
    %1 = tpu.memref_slice %arg2[%0, %c0_i32_0] : memref<64x32xf32, #tpu.memory_space<any>> -> memref<1x32xf32, #tpu.memory_space<any>>
    %c0_i32_1 = arith.constant 0 : i32
    %c0_i32_2 = arith.constant 0 : i32
    %2 = tpu.memref_slice %arg6[%c0_i32_1, %c0_i32_2] : memref<32x32xf32, #tpu.memory_space<vmem>> -> memref<1x32xf32, #tpu.memory_space<vmem>>
    %3 = tpu.memref_slice %arg7[%c0_i32] : memref<1x!tpu.dma_semaphore, #tpu.memory_space<semaphore_mem>> -> memref<1x!tpu.dma_semaphore, #tpu.memory_space<semaphore_mem>>
    %4 = tpu.memref_squeeze %3 : memref<1x!tpu.dma_semaphore, #tpu.memory_space<semaphore_mem>> -> memref<!tpu.dma_semaphore, #tpu.memory_space<semaphore_mem>>
    tpu.enqueue_dma source(%1 : memref<1x32xf32, #tpu.memory_space<any>>) target(%2 : memref<1x32xf32, #tpu.memory_space<vmem>>) target_semaphore(%4 : memref<!tpu.dma_semaphore, #tpu.memory_space<semaphore_mem>>)
    %c1 = arith.constant 1 : index
    %5 = memref.load %arg1[%c1] : memref<32xi32, #tpu.memory_space<smem>>
    %c0_i32_3 = arith.constant 0 : i32
    %c0_i32_4 = arith.constant 0 : i32
    %6 = tpu.memref_slice %arg2[%5, %c0_i32_4] : memref<64x32xf32, #tpu.memory_space<any>> -> memref<1x32xf32, #tpu.memory_space<any>>
    %c1_i32 = arith.constant 1 : i32
    %c0_i32_5 = arith.constant 0 : i32
    %7 = tpu.memref_slice %arg6[%c1_i32, %c0_i32_5] : memref<32x32xf32, #tpu.memory_space<vmem>> -> memref<1x32xf32, #tpu.memory_space<vmem>>
    %8 = tpu.memref_slice %arg7[%c0_i32_3] : memref<1x!tpu.dma_semaphore, #tpu.memory_space<semaphore_mem>> -> memref<1x!tpu.dma_semaphore, #tpu.memory_space<semaphore_mem>>
    %9 = tpu.memref_squeeze %8 : memref<1x!tpu.dma_semaphore, #tpu.memory_space<semaphore_mem>> -> memref<!tpu.dma_semaphore, #tpu.memory_space<semaphore_mem>>
    tpu.enqueue_dma source(%6 : memref<1x32xf32, #tpu.memory_space<any>>) target(%7 : memref<1x32xf32, #tpu.memory_space<vmem>>) target_semaphore(%9 : memref<!tpu.dma_semaphore, #tpu.memory_space<semaphore_mem>>)
    %c2 = arith.constant 2 : index
    %10 = memref.load %arg1[%c2] : memref<32xi32, #tpu.memory_space<smem>>
    %c0_i32_6 = arith.constant 0 : i32
    %c0_i32_7 = arith.constant 0 : i32
    %11 = tpu.memref_slice %arg2[%10, %c0_i32_7] : memref<64x32xf32, #tpu.memory_space<any>> -> memref<1x32xf32, #tpu.memory_space<any>>
    %c2_i32 = arith.constant 2 : i32
    %c0_i32_8 = arith.constant 0 : i32
    %12 = tpu.memref_slice %arg6[%c2_i32, %c0_i32_8] : memref<32x32xf32, #tpu.memory_space<vmem>> -> memref<1x32xf32, #tpu.memory_space<vmem>>
    %13 = tpu.memref_slice %arg7[%c0_i32_6] : memref<1x!tpu.dma_semaphore, #tpu.memory_space<semaphore_mem>> -> memref<1x!tpu.dma_semaphore, #tpu.memory_space<semaphore_mem>>
    %14 = tpu.memref_squeeze %13 : memref<1x!tpu.dma_semaphore, #tpu.memory_space<semaphore_mem>> -> memref<!tpu.dma_semaphore, #tpu.memory_space<semaphore_mem>>
    tpu.enqueue_dma source(%11 : memref<1x32xf32, #tpu.memory_space<any>>) target(%12 : memref<1x32xf32, #tpu.memory_space<vmem>>) target_semaphore(%14 : memref<!tpu.dma_semaphore, #tpu.memory_space<semaphore_mem>>)
    %c3 = arith.constant 3 : index
    %15 = memref.load %arg1[%c3] : memref<32xi32, #tpu.memory_space<smem>>
    %c0_i32_9 = arith.constant 0 : i32
    %c0_i32_10 = arith.constant 0 : i32
    %16 = tpu.memref_slice %arg2[%15, %c0_i32_10] : memref<64x32xf32, #tpu.memory_space<any>> -> memref<1x32xf32, #tpu.memory_space<any>>
    %c3_i32 = arith.constant 3 : i32
    %c0_i32_11 = arith.constant 0 : i32
    %17 = tpu.memref_slice %arg6[%c3_i32, %c0_i32_11] : memref<32x32xf32, #tpu.memory_space<vmem>> -> memref<1x32xf32, #tpu.memory_space<vmem>>
    %18 = tpu.memref_slice %arg7[%c0_i32_9] : memref<1x!tpu.dma_semaphore, #tpu.memory_space<semaphore_mem>> -> memref<1x!tpu.dma_semaphore, #tpu.memory_space<semaphore_mem>>
    %19 = tpu.memref_squeeze %18 : memref<1x!tpu.dma_semaphore, #tpu.memory_space<semaphore_mem>> -> memref<!tpu.dma_semaphore, #tpu.memory_space<semaphore_mem>>
    tpu.enqueue_dma source(%16 : memref<1x32xf32, #tpu.memory_space<any>>) target(%17 : memref<1x32xf32, #tpu.memory_space<vmem>>) target_semaphore(%19 : memref<!tpu.dma_semaphore, #tpu.memory_space<semaphore_mem>>)
    %c4 = arith.constant 4 : index
    %20 = memref.load %arg1[%c4] : memref<32xi32, #tpu.memory_space<smem>>
    %c0_i32_12 = arith.constant 0 : i32
    %c0_i32_13 = arith.constant 0 : i32
    %21 = tpu.memref_slice %arg2[%20, %c0_i32_13] : memref<64x32xf32, #tpu.memory_space<any>> -> memref<1x32xf32, #tpu.memory_space<any>>
    %c4_i32 = arith.constant 4 : i32
    %c0_i32_14 = arith.constant 0 : i32
    %22 = tpu.memref_slice %arg6[%c4_i32, %c0_i32_14] : memref<32x32xf32, #tpu.memory_space<vmem>> -> memref<1x32xf32, #tpu.memory_space<vmem>>
    %23 = tpu.memref_slice %arg7[%c0_i32_12] : memref<1x!tpu.dma_semaphore, #tpu.memory_space<semaphore_mem>> -> memref<1x!tpu.dma_semaphore, #tpu.memory_space<semaphore_mem>>
    %24 = tpu.memref_squeeze %23 : memref<1x!tpu.dma_semaphore, #tpu.memory_space<semaphore_mem>> -> memref<!tpu.dma_semaphore, #tpu.memory_space<semaphore_mem>>
    tpu.enqueue_dma source(%21 : memref<1x32xf32, #tpu.memory_space<any>>) target(%22 : memref<1x32xf32, #tpu.memory_space<vmem>>) target_semaphore(%24 : memref<!tpu.dma_semaphore, #tpu.memory_space<semaphore_mem>>)
    %c5 = arith.constant 5 : index
    %25 = memref.load %arg1[%c5] : memref<32xi32, #tpu.memory_space<smem>>
    %c0_i32_15 = arith.constant 0 : i32
    %c0_i32_16 = arith.constant 0 : i32
    %26 = tpu.memref_slice %arg2[%25, %c0_i32_16] : memref<64x32xf32, #tpu.memory_space<any>> -> memref<1x32xf32, #tpu.memory_space<any>>
    %c5_i32 = arith.constant 5 : i32
    %c0_i32_17 = arith.constant 0 : i32
    %27 = tpu.memref_slice %arg6[%c5_i32, %c0_i32_17] : memref<32x32xf32, #tpu.memory_space<vmem>> -> memref<1x32xf32, #tpu.memory_space<vmem>>
    %28 = tpu.memref_slice %arg7[%c0_i32_15] : memref<1x!tpu.dma_semaphore, #tpu.memory_space<semaphore_mem>> -> memref<1x!tpu.dma_semaphore, #tpu.memory_space<semaphore_mem>>
    %29 = tpu.memref_squeeze %28 : memref<1x!tpu.dma_semaphore, #tpu.memory_space<semaphore_mem>> -> memref<!tpu.dma_semaphore, #tpu.memory_space<semaphore_mem>>
    tpu.enqueue_dma source(%26 : memref<1x32xf32, #tpu.memory_space<any>>) target(%27 : memref<1x32xf32, #tpu.memory_space<vmem>>) target_semaphore(%29 : memref<!tpu.dma_semaphore, #tpu.memory_space<semaphore_mem>>)
    %c6 = arith.constant 6 : index
    %30 = memref.load %arg1[%c6] : memref<32xi32, #tpu.memory_space<smem>>
    %c0_i32_18 = arith.constant 0 : i32
    %c0_i32_19 = arith.constant 0 : i32
    %31 = tpu.memref_slice %arg2[%30, %c0_i32_19] : memref<64x32xf32, #tpu.memory_space<any>> -> memref<1x32xf32, #tpu.memory_space<any>>
    %c6_i32 = arith.constant 6 : i32
    %c0_i32_20 = arith.constant 0 : i32
    %32 = tpu.memref_slice %arg6[%c6_i32, %c0_i32_20] : memref<32x32xf32, #tpu.memory_space<vmem>> -> memref<1x32xf32, #tpu.memory_space<vmem>>
    %33 = tpu.memref_slice %arg7[%c0_i32_18] : memref<1x!tpu.dma_semaphore, #tpu.memory_space<semaphore_mem>> -> memref<1x!tpu.dma_semaphore, #tpu.memory_space<semaphore_mem>>
    %34 = tpu.memref_squeeze %33 : memref<1x!tpu.dma_semaphore, #tpu.memory_space<semaphore_mem>> -> memref<!tpu.dma_semaphore, #tpu.memory_space<semaphore_mem>>
    tpu.enqueue_dma source(%31 : memref<1x32xf32, #tpu.memory_space<any>>) target(%32 : memref<1x32xf32, #tpu.memory_space<vmem>>) target_semaphore(%34 : memref<!tpu.dma_semaphore, #tpu.memory_space<semaphore_mem>>)
    %c7 = arith.constant 7 : index
    %35 = memref.load %arg1[%c7] : memref<32xi32, #tpu.memory_space<smem>>
    %c0_i32_21 = arith.constant 0 : i32
    %c0_i32_22 = arith.constant 0 : i32
    %36 = tpu.memref_slice %arg2[%35, %c0_i32_22] : memref<64x32xf32, #tpu.memory_space<any>> -> memref<1x32xf32, #tpu.memory_space<any>>
    %c7_i32 = arith.constant 7 : i32
    %c0_i32_23 = arith.constant 0 : i32
    %37 = tpu.memref_slice %arg6[%c7_i32, %c0_i32_23] : memref<32x32xf32, #tpu.memory_space<vmem>> -> memref<1x32xf32, #tpu.memory_space<vmem>>
    %38 = tpu.memref_slice %arg7[%c0_i32_21] : memref<1x!tpu.dma_semaphore, #tpu.memory_space<semaphore_mem>> -> memref<1x!tpu.dma_semaphore, #tpu.memory_space<semaphore_mem>>
    %39 = tpu.memref_squeeze %38 : memref<1x!tpu.dma_semaphore, #tpu.memory_space<semaphore_mem>> -> memref<!tpu.dma_semaphore, #tpu.memory_space<semaphore_mem>>
    tpu.enqueue_dma source(%36 : memref<1x32xf32, #tpu.memory_space<any>>) target(%37 : memref<1x32xf32, #tpu.memory_space<vmem>>) target_semaphore(%39 : memref<!tpu.dma_semaphore, #tpu.memory_space<semaphore_mem>>)
    %c8 = arith.constant 8 : index
    %40 = memref.load %arg1[%c8] : memref<32xi32, #tpu.memory_space<smem>>
    %c0_i32_24 = arith.constant 0 : i32
    %c0_i32_25 = arith.constant 0 : i32
    %41 = tpu.memref_slice %arg2[%40, %c0_i32_25] : memref<64x32xf32, #tpu.memory_space<any>> -> memref<1x32xf32, #tpu.memory_space<any>>
    %c8_i32 = arith.constant 8 : i32
    %c0_i32_26 = arith.constant 0 : i32
    %42 = tpu.memref_slice %arg6[%c8_i32, %c0_i32_26] : memref<32x32xf32, #tpu.memory_space<vmem>> -> memref<1x32xf32, #tpu.memory_space<vmem>>
    %43 = tpu.memref_slice %arg7[%c0_i32_24] : memref<1x!tpu.dma_semaphore, #tpu.memory_space<semaphore_mem>> -> memref<1x!tpu.dma_semaphore, #tpu.memory_space<semaphore_mem>>
    %44 = tpu.memref_squeeze %43 : memref<1x!tpu.dma_semaphore, #tpu.memory_space<semaphore_mem>> -> memref<!tpu.dma_semaphore, #tpu.memory_space<semaphore_mem>>
    tpu.enqueue_dma source(%41 : memref<1x32xf32, #tpu.memory_space<any>>) target(%42 : memref<1x32xf32, #tpu.memory_space<vmem>>) target_semaphore(%44 : memref<!tpu.dma_semaphore, #tpu.memory_space<semaphore_mem>>)
    %c9 = arith.constant 9 : index
    %45 = memref.load %arg1[%c9] : memref<32xi32, #tpu.memory_space<smem>>
    %c0_i32_27 = arith.constant 0 : i32
    %c0_i32_28 = arith.constant 0 : i32
    %46 = tpu.memref_slice %arg2[%45, %c0_i32_28] : memref<64x32xf32, #tpu.memory_space<any>> -> memref<1x32xf32, #tpu.memory_space<any>>
    %c9_i32 = arith.constant 9 : i32
    %c0_i32_29 = arith.constant 0 : i32
    %47 = tpu.memref_slice %arg6[%c9_i32, %c0_i32_29] : memref<32x32xf32, #tpu.memory_space<vmem>> -> memref<1x32xf32, #tpu.memory_space<vmem>>
    %48 = tpu.memref_slice %arg7[%c0_i32_27] : memref<1x!tpu.dma_semaphore, #tpu.memory_space<semaphore_mem>> -> memref<1x!tpu.dma_semaphore, #tpu.memory_space<semaphore_mem>>
    %49 = tpu.memref_squeeze %48 : memref<1x!tpu.dma_semaphore, #tpu.memory_space<semaphore_mem>> -> memref<!tpu.dma_semaphore, #tpu.memory_space<semaphore_mem>>
    tpu.enqueue_dma source(%46 : memref<1x32xf32, #tpu.memory_space<any>>) target(%47 : memref<1x32xf32, #tpu.memory_space<vmem>>) target_semaphore(%49 : memref<!tpu.dma_semaphore, #tpu.memory_space<semaphore_mem>>)
    %c10 = arith.constant 10 : index
    %50 = memref.load %arg1[%c10] : memref<32xi32, #tpu.memory_space<smem>>
    %c0_i32_30 = arith.constant 0 : i32
    %c0_i32_31 = arith.constant 0 : i32
    %51 = tpu.memref_slice %arg2[%50, %c0_i32_31] : memref<64x32xf32, #tpu.memory_space<any>> -> memref<1x32xf32, #tpu.memory_space<any>>
    %c10_i32 = arith.constant 10 : i32
    %c0_i32_32 = arith.constant 0 : i32
    %52 = tpu.memref_slice %arg6[%c10_i32, %c0_i32_32] : memref<32x32xf32, #tpu.memory_space<vmem>> -> memref<1x32xf32, #tpu.memory_space<vmem>>
    %53 = tpu.memref_slice %arg7[%c0_i32_30] : memref<1x!tpu.dma_semaphore, #tpu.memory_space<semaphore_mem>> -> memref<1x!tpu.dma_semaphore, #tpu.memory_space<semaphore_mem>>
    %54 = tpu.memref_squeeze %53 : memref<1x!tpu.dma_semaphore, #tpu.memory_space<semaphore_mem>> -> memref<!tpu.dma_semaphore, #tpu.memory_space<semaphore_mem>>
    tpu.enqueue_dma source(%51 : memref<1x32xf32, #tpu.memory_space<any>>) target(%52 : memref<1x32xf32, #tpu.memory_space<vmem>>) target_semaphore(%54 : memref<!tpu.dma_semaphore, #tpu.memory_space<semaphore_mem>>)
    %c11 = arith.constant 11 : index
    %55 = memref.load %arg1[%c11] : memref<32xi32, #tpu.memory_space<smem>>
    %c0_i32_33 = arith.constant 0 : i32
    %c0_i32_34 = arith.constant 0 : i32
    %56 = tpu.memref_slice %arg2[%55, %c0_i32_34] : memref<64x32xf32, #tpu.memory_space<any>> -> memref<1x32xf32, #tpu.memory_space<any>>
    %c11_i32 = arith.constant 11 : i32
    %c0_i32_35 = arith.constant 0 : i32
    %57 = tpu.memref_slice %arg6[%c11_i32, %c0_i32_35] : memref<32x32xf32, #tpu.memory_space<vmem>> -> memref<1x32xf32, #tpu.memory_space<vmem>>
    %58 = tpu.memref_slice %arg7[%c0_i32_33] : memref<1x!tpu.dma_semaphore, #tpu.memory_space<semaphore_mem>> -> memref<1x!tpu.dma_semaphore, #tpu.memory_space<semaphore_mem>>
    %59 = tpu.memref_squeeze %58 : memref<1x!tpu.dma_semaphore, #tpu.memory_space<semaphore_mem>> -> memref<!tpu.dma_semaphore, #tpu.memory_space<semaphore_mem>>
    tpu.enqueue_dma source(%56 : memref<1x32xf32, #tpu.memory_space<any>>) target(%57 : memref<1x32xf32, #tpu.memory_space<vmem>>) target_semaphore(%59 : memref<!tpu.dma_semaphore, #tpu.memory_space<semaphore_mem>>)
    %c12 = arith.constant 12 : index
    %60 = memref.load %arg1[%c12] : memref<32xi32, #tpu.memory_space<smem>>
    %c0_i32_36 = arith.constant 0 : i32
    %c0_i32_37 = arith.constant 0 : i32
    %61 = tpu.memref_slice %arg2[%60, %c0_i32_37] : memref<64x32xf32, #tpu.memory_space<any>> -> memref<1x32xf32, #tpu.memory_space<any>>
    %c12_i32 = arith.constant 12 : i32
    %c0_i32_38 = arith.constant 0 : i32
    %62 = tpu.memref_slice %arg6[%c12_i32, %c0_i32_38] : memref<32x32xf32, #tpu.memory_space<vmem>> -> memref<1x32xf32, #tpu.memory_space<vmem>>
    %63 = tpu.memref_slice %arg7[%c0_i32_36] : memref<1x!tpu.dma_semaphore, #tpu.memory_space<semaphore_mem>> -> memref<1x!tpu.dma_semaphore, #tpu.memory_space<semaphore_mem>>
    %64 = tpu.memref_squeeze %63 : memref<1x!tpu.dma_semaphore, #tpu.memory_space<semaphore_mem>> -> memref<!tpu.dma_semaphore, #tpu.memory_space<semaphore_mem>>
    tpu.enqueue_dma source(%61 : memref<1x32xf32, #tpu.memory_space<any>>) target(%62 : memref<1x32xf32, #tpu.memory_space<vmem>>) target_semaphore(%64 : memref<!tpu.dma_semaphore, #tpu.memory_space<semaphore_mem>>)
    %c13 = arith.constant 13 : index
    %65 = memref.load %arg1[%c13] : memref<32xi32, #tpu.memory_space<smem>>
    %c0_i32_39 = arith.constant 0 : i32
    %c0_i32_40 = arith.constant 0 : i32
    %66 = tpu.memref_slice %arg2[%65, %c0_i32_40] : memref<64x32xf32, #tpu.memory_space<any>> -> memref<1x32xf32, #tpu.memory_space<any>>
    %c13_i32 = arith.constant 13 : i32
    %c0_i32_41 = arith.constant 0 : i32
    %67 = tpu.memref_slice %arg6[%c13_i32, %c0_i32_41] : memref<32x32xf32, #tpu.memory_space<vmem>> -> memref<1x32xf32, #tpu.memory_space<vmem>>
    %68 = tpu.memref_slice %arg7[%c0_i32_39] : memref<1x!tpu.dma_semaphore, #tpu.memory_space<semaphore_mem>> -> memref<1x!tpu.dma_semaphore, #tpu.memory_space<semaphore_mem>>
    %69 = tpu.memref_squeeze %68 : memref<1x!tpu.dma_semaphore, #tpu.memory_space<semaphore_mem>> -> memref<!tpu.dma_semaphore, #tpu.memory_space<semaphore_mem>>
    tpu.enqueue_dma source(%66 : memref<1x32xf32, #tpu.memory_space<any>>) target(%67 : memref<1x32xf32, #tpu.memory_space<vmem>>) target_semaphore(%69 : memref<!tpu.dma_semaphore, #tpu.memory_space<semaphore_mem>>)
    %c14 = arith.constant 14 : index
    %70 = memref.load %arg1[%c14] : memref<32xi32, #tpu.memory_space<smem>>
    %c0_i32_42 = arith.constant 0 : i32
    %c0_i32_43 = arith.constant 0 : i32
    %71 = tpu.memref_slice %arg2[%70, %c0_i32_43] : memref<64x32xf32, #tpu.memory_space<any>> -> memref<1x32xf32, #tpu.memory_space<any>>
    %c14_i32 = arith.constant 14 : i32
    %c0_i32_44 = arith.constant 0 : i32
    %72 = tpu.memref_slice %arg6[%c14_i32, %c0_i32_44] : memref<32x32xf32, #tpu.memory_space<vmem>> -> memref<1x32xf32, #tpu.memory_space<vmem>>
    %73 = tpu.memref_slice %arg7[%c0_i32_42] : memref<1x!tpu.dma_semaphore, #tpu.memory_space<semaphore_mem>> -> memref<1x!tpu.dma_semaphore, #tpu.memory_space<semaphore_mem>>
    %74 = tpu.memref_squeeze %73 : memref<1x!tpu.dma_semaphore, #tpu.memory_space<semaphore_mem>> -> memref<!tpu.dma_semaphore, #tpu.memory_space<semaphore_mem>>
    tpu.enqueue_dma source(%71 : memref<1x32xf32, #tpu.memory_space<any>>) target(%72 : memref<1x32xf32, #tpu.memory_space<vmem>>) target_semaphore(%74 : memref<!tpu.dma_semaphore, #tpu.memory_space<semaphore_mem>>)
    %c15 = arith.constant 15 : index
    %75 = memref.load %arg1[%c15] : memref<32xi32, #tpu.memory_space<smem>>
    %c0_i32_45 = arith.constant 0 : i32
    %c0_i32_46 = arith.constant 0 : i32
    %76 = tpu.memref_slice %arg2[%75, %c0_i32_46] : memref<64x32xf32, #tpu.memory_space<any>> -> memref<1x32xf32, #tpu.memory_space<any>>
    %c15_i32 = arith.constant 15 : i32
    %c0_i32_47 = arith.constant 0 : i32
    %77 = tpu.memref_slice %arg6[%c15_i32, %c0_i32_47] : memref<32x32xf32, #tpu.memory_space<vmem>> -> memref<1x32xf32, #tpu.memory_space<vmem>>
    %78 = tpu.memref_slice %arg7[%c0_i32_45] : memref<1x!tpu.dma_semaphore, #tpu.memory_space<semaphore_mem>> -> memref<1x!tpu.dma_semaphore, #tpu.memory_space<semaphore_mem>>
    %79 = tpu.memref_squeeze %78 : memref<1x!tpu.dma_semaphore, #tpu.memory_space<semaphore_mem>> -> memref<!tpu.dma_semaphore, #tpu.memory_space<semaphore_mem>>
    tpu.enqueue_dma source(%76 : memref<1x32xf32, #tpu.memory_space<any>>) target(%77 : memref<1x32xf32, #tpu.memory_space<vmem>>) target_semaphore(%79 : memref<!tpu.dma_semaphore, #tpu.memory_space<semaphore_mem>>)
    %c16 = arith.constant 16 : index
    %80 = memref.load %arg1[%c16] : memref<32xi32, #tpu.memory_space<smem>>
    %c0_i32_48 = arith.constant 0 : i32
    %c0_i32_49 = arith.constant 0 : i32
    %81 = tpu.memref_slice %arg2[%80, %c0_i32_49] : memref<64x32xf32, #tpu.memory_space<any>> -> memref<1x32xf32, #tpu.memory_space<any>>
    %c16_i32 = arith.constant 16 : i32
    %c0_i32_50 = arith.constant 0 : i32
    %82 = tpu.memref_slice %arg6[%c16_i32, %c0_i32_50] : memref<32x32xf32, #tpu.memory_space<vmem>> -> memref<1x32xf32, #tpu.memory_space<vmem>>
    %83 = tpu.memref_slice %arg7[%c0_i32_48] : memref<1x!tpu.dma_semaphore, #tpu.memory_space<semaphore_mem>> -> memref<1x!tpu.dma_semaphore, #tpu.memory_space<semaphore_mem>>
    %84 = tpu.memref_squeeze %83 : memref<1x!tpu.dma_semaphore, #tpu.memory_space<semaphore_mem>> -> memref<!tpu.dma_semaphore, #tpu.memory_space<semaphore_mem>>
    tpu.enqueue_dma source(%81 : memref<1x32xf32, #tpu.memory_space<any>>) target(%82 : memref<1x32xf32, #tpu.memory_space<vmem>>) target_semaphore(%84 : memref<!tpu.dma_semaphore, #tpu.memory_space<semaphore_mem>>)
    %c17 = arith.constant 17 : index
    %85 = memref.load %arg1[%c17] : memref<32xi32, #tpu.memory_space<smem>>
    %c0_i32_51 = arith.constant 0 : i32
    %c0_i32_52 = arith.constant 0 : i32
    %86 = tpu.memref_slice %arg2[%85, %c0_i32_52] : memref<64x32xf32, #tpu.memory_space<any>> -> memref<1x32xf32, #tpu.memory_space<any>>
    %c17_i32 = arith.constant 17 : i32
    %c0_i32_53 = arith.constant 0 : i32
    %87 = tpu.memref_slice %arg6[%c17_i32, %c0_i32_53] : memref<32x32xf32, #tpu.memory_space<vmem>> -> memref<1x32xf32, #tpu.memory_space<vmem>>
    %88 = tpu.memref_slice %arg7[%c0_i32_51] : memref<1x!tpu.dma_semaphore, #tpu.memory_space<semaphore_mem>> -> memref<1x!tpu.dma_semaphore, #tpu.memory_space<semaphore_mem>>
    %89 = tpu.memref_squeeze %88 : memref<1x!tpu.dma_semaphore, #tpu.memory_space<semaphore_mem>> -> memref<!tpu.dma_semaphore, #tpu.memory_space<semaphore_mem>>
    tpu.enqueue_dma source(%86 : memref<1x32xf32, #tpu.memory_space<any>>) target(%87 : memref<1x32xf32, #tpu.memory_space<vmem>>) target_semaphore(%89 : memref<!tpu.dma_semaphore, #tpu.memory_space<semaphore_mem>>)
    %c18 = arith.constant 18 : index
    %90 = memref.load %arg1[%c18] : memref<32xi32, #tpu.memory_space<smem>>
    %c0_i32_54 = arith.constant 0 : i32
    %c0_i32_55 = arith.constant 0 : i32
    %91 = tpu.memref_slice %arg2[%90, %c0_i32_55] : memref<64x32xf32, #tpu.memory_space<any>> -> memref<1x32xf32, #tpu.memory_space<any>>
    %c18_i32 = arith.constant 18 : i32
    %c0_i32_56 = arith.constant 0 : i32
    %92 = tpu.memref_slice %arg6[%c18_i32, %c0_i32_56] : memref<32x32xf32, #tpu.memory_space<vmem>> -> memref<1x32xf32, #tpu.memory_space<vmem>>
    %93 = tpu.memref_slice %arg7[%c0_i32_54] : memref<1x!tpu.dma_semaphore, #tpu.memory_space<semaphore_mem>> -> memref<1x!tpu.dma_semaphore, #tpu.memory_space<semaphore_mem>>
    %94 = tpu.memref_squeeze %93 : memref<1x!tpu.dma_semaphore, #tpu.memory_space<semaphore_mem>> -> memref<!tpu.dma_semaphore, #tpu.memory_space<semaphore_mem>>
    tpu.enqueue_dma source(%91 : memref<1x32xf32, #tpu.memory_space<any>>) target(%92 : memref<1x32xf32, #tpu.memory_space<vmem>>) target_semaphore(%94 : memref<!tpu.dma_semaphore, #tpu.memory_space<semaphore_mem>>)
    %c19 = arith.constant 19 : index
    %95 = memref.load %arg1[%c19] : memref<32xi32, #tpu.memory_space<smem>>
    %c0_i32_57 = arith.constant 0 : i32
    %c0_i32_58 = arith.constant 0 : i32
    %96 = tpu.memref_slice %arg2[%95, %c0_i32_58] : memref<64x32xf32, #tpu.memory_space<any>> -> memref<1x32xf32, #tpu.memory_space<any>>
    %c19_i32 = arith.constant 19 : i32
    %c0_i32_59 = arith.constant 0 : i32
    %97 = tpu.memref_slice %arg6[%c19_i32, %c0_i32_59] : memref<32x32xf32, #tpu.memory_space<vmem>> -> memref<1x32xf32, #tpu.memory_space<vmem>>
    %98 = tpu.memref_slice %arg7[%c0_i32_57] : memref<1x!tpu.dma_semaphore, #tpu.memory_space<semaphore_mem>> -> memref<1x!tpu.dma_semaphore, #tpu.memory_space<semaphore_mem>>
    %99 = tpu.memref_squeeze %98 : memref<1x!tpu.dma_semaphore, #tpu.memory_space<semaphore_mem>> -> memref<!tpu.dma_semaphore, #tpu.memory_space<semaphore_mem>>
    tpu.enqueue_dma source(%96 : memref<1x32xf32, #tpu.memory_space<any>>) target(%97 : memref<1x32xf32, #tpu.memory_space<vmem>>) target_semaphore(%99 : memref<!tpu.dma_semaphore, #tpu.memory_space<semaphore_mem>>)
    %c20 = arith.constant 20 : index
    %100 = memref.load %arg1[%c20] : memref<32xi32, #tpu.memory_space<smem>>
    %c0_i32_60 = arith.constant 0 : i32
    %c0_i32_61 = arith.constant 0 : i32
    %101 = tpu.memref_slice %arg2[%100, %c0_i32_61] : memref<64x32xf32, #tpu.memory_space<any>> -> memref<1x32xf32, #tpu.memory_space<any>>
    %c20_i32 = arith.constant 20 : i32
    %c0_i32_62 = arith.constant 0 : i32
    %102 = tpu.memref_slice %arg6[%c20_i32, %c0_i32_62] : memref<32x32xf32, #tpu.memory_space<vmem>> -> memref<1x32xf32, #tpu.memory_space<vmem>>
    %103 = tpu.memref_slice %arg7[%c0_i32_60] : memref<1x!tpu.dma_semaphore, #tpu.memory_space<semaphore_mem>> -> memref<1x!tpu.dma_semaphore, #tpu.memory_space<semaphore_mem>>
    %104 = tpu.memref_squeeze %103 : memref<1x!tpu.dma_semaphore, #tpu.memory_space<semaphore_mem>> -> memref<!tpu.dma_semaphore, #tpu.memory_space<semaphore_mem>>
    tpu.enqueue_dma source(%101 : memref<1x32xf32, #tpu.memory_space<any>>) target(%102 : memref<1x32xf32, #tpu.memory_space<vmem>>) target_semaphore(%104 : memref<!tpu.dma_semaphore, #tpu.memory_space<semaphore_mem>>)
    %c21 = arith.constant 21 : index
    %105 = memref.load %arg1[%c21] : memref<32xi32, #tpu.memory_space<smem>>
    %c0_i32_63 = arith.constant 0 : i32
    %c0_i32_64 = arith.constant 0 : i32
    %106 = tpu.memref_slice %arg2[%105, %c0_i32_64] : memref<64x32xf32, #tpu.memory_space<any>> -> memref<1x32xf32, #tpu.memory_space<any>>
    %c21_i32 = arith.constant 21 : i32
    %c0_i32_65 = arith.constant 0 : i32
    %107 = tpu.memref_slice %arg6[%c21_i32, %c0_i32_65] : memref<32x32xf32, #tpu.memory_space<vmem>> -> memref<1x32xf32, #tpu.memory_space<vmem>>
    %108 = tpu.memref_slice %arg7[%c0_i32_63] : memref<1x!tpu.dma_semaphore, #tpu.memory_space<semaphore_mem>> -> memref<1x!tpu.dma_semaphore, #tpu.memory_space<semaphore_mem>>
    %109 = tpu.memref_squeeze %108 : memref<1x!tpu.dma_semaphore, #tpu.memory_space<semaphore_mem>> -> memref<!tpu.dma_semaphore, #tpu.memory_space<semaphore_mem>>
    tpu.enqueue_dma source(%106 : memref<1x32xf32, #tpu.memory_space<any>>) target(%107 : memref<1x32xf32, #tpu.memory_space<vmem>>) target_semaphore(%109 : memref<!tpu.dma_semaphore, #tpu.memory_space<semaphore_mem>>)
    %c22 = arith.constant 22 : index
    %110 = memref.load %arg1[%c22] : memref<32xi32, #tpu.memory_space<smem>>
    %c0_i32_66 = arith.constant 0 : i32
    %c0_i32_67 = arith.constant 0 : i32
    %111 = tpu.memref_slice %arg2[%110, %c0_i32_67] : memref<64x32xf32, #tpu.memory_space<any>> -> memref<1x32xf32, #tpu.memory_space<any>>
    %c22_i32 = arith.constant 22 : i32
    %c0_i32_68 = arith.constant 0 : i32
    %112 = tpu.memref_slice %arg6[%c22_i32, %c0_i32_68] : memref<32x32xf32, #tpu.memory_space<vmem>> -> memref<1x32xf32, #tpu.memory_space<vmem>>
    %113 = tpu.memref_slice %arg7[%c0_i32_66] : memref<1x!tpu.dma_semaphore, #tpu.memory_space<semaphore_mem>> -> memref<1x!tpu.dma_semaphore, #tpu.memory_space<semaphore_mem>>
    %114 = tpu.memref_squeeze %113 : memref<1x!tpu.dma_semaphore, #tpu.memory_space<semaphore_mem>> -> memref<!tpu.dma_semaphore, #tpu.memory_space<semaphore_mem>>
    tpu.enqueue_dma source(%111 : memref<1x32xf32, #tpu.memory_space<any>>) target(%112 : memref<1x32xf32, #tpu.memory_space<vmem>>) target_semaphore(%114 : memref<!tpu.dma_semaphore, #tpu.memory_space<semaphore_mem>>)
    %c23 = arith.constant 23 : index
    %115 = memref.load %arg1[%c23] : memref<32xi32, #tpu.memory_space<smem>>
    %c0_i32_69 = arith.constant 0 : i32
    %c0_i32_70 = arith.constant 0 : i32
    %116 = tpu.memref_slice %arg2[%115, %c0_i32_70] : memref<64x32xf32, #tpu.memory_space<any>> -> memref<1x32xf32, #tpu.memory_space<any>>
    %c23_i32 = arith.constant 23 : i32
    %c0_i32_71 = arith.constant 0 : i32
    %117 = tpu.memref_slice %arg6[%c23_i32, %c0_i32_71] : memref<32x32xf32, #tpu.memory_space<vmem>> -> memref<1x32xf32, #tpu.memory_space<vmem>>
    %118 = tpu.memref_slice %arg7[%c0_i32_69] : memref<1x!tpu.dma_semaphore, #tpu.memory_space<semaphore_mem>> -> memref<1x!tpu.dma_semaphore, #tpu.memory_space<semaphore_mem>>
    %119 = tpu.memref_squeeze %118 : memref<1x!tpu.dma_semaphore, #tpu.memory_space<semaphore_mem>> -> memref<!tpu.dma_semaphore, #tpu.memory_space<semaphore_mem>>
    tpu.enqueue_dma source(%116 : memref<1x32xf32, #tpu.memory_space<any>>) target(%117 : memref<1x32xf32, #tpu.memory_space<vmem>>) target_semaphore(%119 : memref<!tpu.dma_semaphore, #tpu.memory_space<semaphore_mem>>)
    %c24 = arith.constant 24 : index
    %120 = memref.load %arg1[%c24] : memref<32xi32, #tpu.memory_space<smem>>
    %c0_i32_72 = arith.constant 0 : i32
    %c0_i32_73 = arith.constant 0 : i32
    %121 = tpu.memref_slice %arg2[%120, %c0_i32_73] : memref<64x32xf32, #tpu.memory_space<any>> -> memref<1x32xf32, #tpu.memory_space<any>>
    %c24_i32 = arith.constant 24 : i32
    %c0_i32_74 = arith.constant 0 : i32
    %122 = tpu.memref_slice %arg6[%c24_i32, %c0_i32_74] : memref<32x32xf32, #tpu.memory_space<vmem>> -> memref<1x32xf32, #tpu.memory_space<vmem>>
    %123 = tpu.memref_slice %arg7[%c0_i32_72] : memref<1x!tpu.dma_semaphore, #tpu.memory_space<semaphore_mem>> -> memref<1x!tpu.dma_semaphore, #tpu.memory_space<semaphore_mem>>
    %124 = tpu.memref_squeeze %123 : memref<1x!tpu.dma_semaphore, #tpu.memory_space<semaphore_mem>> -> memref<!tpu.dma_semaphore, #tpu.memory_space<semaphore_mem>>
    tpu.enqueue_dma source(%121 : memref<1x32xf32, #tpu.memory_space<any>>) target(%122 : memref<1x32xf32, #tpu.memory_space<vmem>>) target_semaphore(%124 : memref<!tpu.dma_semaphore, #tpu.memory_space<semaphore_mem>>)
    %c25 = arith.constant 25 : index
    %125 = memref.load %arg1[%c25] : memref<32xi32, #tpu.memory_space<smem>>
    %c0_i32_75 = arith.constant 0 : i32
    %c0_i32_76 = arith.constant 0 : i32
    %126 = tpu.memref_slice %arg2[%125, %c0_i32_76] : memref<64x32xf32, #tpu.memory_space<any>> -> memref<1x32xf32, #tpu.memory_space<any>>
    %c25_i32 = arith.constant 25 : i32
    %c0_i32_77 = arith.constant 0 : i32
    %127 = tpu.memref_slice %arg6[%c25_i32, %c0_i32_77] : memref<32x32xf32, #tpu.memory_space<vmem>> -> memref<1x32xf32, #tpu.memory_space<vmem>>
    %128 = tpu.memref_slice %arg7[%c0_i32_75] : memref<1x!tpu.dma_semaphore, #tpu.memory_space<semaphore_mem>> -> memref<1x!tpu.dma_semaphore, #tpu.memory_space<semaphore_mem>>
    %129 = tpu.memref_squeeze %128 : memref<1x!tpu.dma_semaphore, #tpu.memory_space<semaphore_mem>> -> memref<!tpu.dma_semaphore, #tpu.memory_space<semaphore_mem>>
    tpu.enqueue_dma source(%126 : memref<1x32xf32, #tpu.memory_space<any>>) target(%127 : memref<1x32xf32, #tpu.memory_space<vmem>>) target_semaphore(%129 : memref<!tpu.dma_semaphore, #tpu.memory_space<semaphore_mem>>)
    %c26 = arith.constant 26 : index
    %130 = memref.load %arg1[%c26] : memref<32xi32, #tpu.memory_space<smem>>
    %c0_i32_78 = arith.constant 0 : i32
    %c0_i32_79 = arith.constant 0 : i32
    %131 = tpu.memref_slice %arg2[%130, %c0_i32_79] : memref<64x32xf32, #tpu.memory_space<any>> -> memref<1x32xf32, #tpu.memory_space<any>>
    %c26_i32 = arith.constant 26 : i32
    %c0_i32_80 = arith.constant 0 : i32
    %132 = tpu.memref_slice %arg6[%c26_i32, %c0_i32_80] : memref<32x32xf32, #tpu.memory_space<vmem>> -> memref<1x32xf32, #tpu.memory_space<vmem>>
    %133 = tpu.memref_slice %arg7[%c0_i32_78] : memref<1x!tpu.dma_semaphore, #tpu.memory_space<semaphore_mem>> -> memref<1x!tpu.dma_semaphore, #tpu.memory_space<semaphore_mem>>
    %134 = tpu.memref_squeeze %133 : memref<1x!tpu.dma_semaphore, #tpu.memory_space<semaphore_mem>> -> memref<!tpu.dma_semaphore, #tpu.memory_space<semaphore_mem>>
    tpu.enqueue_dma source(%131 : memref<1x32xf32, #tpu.memory_space<any>>) target(%132 : memref<1x32xf32, #tpu.memory_space<vmem>>) target_semaphore(%134 : memref<!tpu.dma_semaphore, #tpu.memory_space<semaphore_mem>>)
    %c27 = arith.constant 27 : index
    %135 = memref.load %arg1[%c27] : memref<32xi32, #tpu.memory_space<smem>>
    %c0_i32_81 = arith.constant 0 : i32
    %c0_i32_82 = arith.constant 0 : i32
    %136 = tpu.memref_slice %arg2[%135, %c0_i32_82] : memref<64x32xf32, #tpu.memory_space<any>> -> memref<1x32xf32, #tpu.memory_space<any>>
    %c27_i32 = arith.constant 27 : i32
    %c0_i32_83 = arith.constant 0 : i32
    %137 = tpu.memref_slice %arg6[%c27_i32, %c0_i32_83] : memref<32x32xf32, #tpu.memory_space<vmem>> -> memref<1x32xf32, #tpu.memory_space<vmem>>
    %138 = tpu.memref_slice %arg7[%c0_i32_81] : memref<1x!tpu.dma_semaphore, #tpu.memory_space<semaphore_mem>> -> memref<1x!tpu.dma_semaphore, #tpu.memory_space<semaphore_mem>>
    %139 = tpu.memref_squeeze %138 : memref<1x!tpu.dma_semaphore, #tpu.memory_space<semaphore_mem>> -> memref<!tpu.dma_semaphore, #tpu.memory_space<semaphore_mem>>
    tpu.enqueue_dma source(%136 : memref<1x32xf32, #tpu.memory_space<any>>) target(%137 : memref<1x32xf32, #tpu.memory_space<vmem>>) target_semaphore(%139 : memref<!tpu.dma_semaphore, #tpu.memory_space<semaphore_mem>>)
    %c28 = arith.constant 28 : index
    %140 = memref.load %arg1[%c28] : memref<32xi32, #tpu.memory_space<smem>>
    %c0_i32_84 = arith.constant 0 : i32
    %c0_i32_85 = arith.constant 0 : i32
    %141 = tpu.memref_slice %arg2[%140, %c0_i32_85] : memref<64x32xf32, #tpu.memory_space<any>> -> memref<1x32xf32, #tpu.memory_space<any>>
    %c28_i32 = arith.constant 28 : i32
    %c0_i32_86 = arith.constant 0 : i32
    %142 = tpu.memref_slice %arg6[%c28_i32, %c0_i32_86] : memref<32x32xf32, #tpu.memory_space<vmem>> -> memref<1x32xf32, #tpu.memory_space<vmem>>
    %143 = tpu.memref_slice %arg7[%c0_i32_84] : memref<1x!tpu.dma_semaphore, #tpu.memory_space<semaphore_mem>> -> memref<1x!tpu.dma_semaphore, #tpu.memory_space<semaphore_mem>>
    %144 = tpu.memref_squeeze %143 : memref<1x!tpu.dma_semaphore, #tpu.memory_space<semaphore_mem>> -> memref<!tpu.dma_semaphore, #tpu.memory_space<semaphore_mem>>
    tpu.enqueue_dma source(%141 : memref<1x32xf32, #tpu.memory_space<any>>) target(%142 : memref<1x32xf32, #tpu.memory_space<vmem>>) target_semaphore(%144 : memref<!tpu.dma_semaphore, #tpu.memory_space<semaphore_mem>>)
    %c29 = arith.constant 29 : index
    %145 = memref.load %arg1[%c29] : memref<32xi32, #tpu.memory_space<smem>>
    %c0_i32_87 = arith.constant 0 : i32
    %c0_i32_88 = arith.constant 0 : i32
    %146 = tpu.memref_slice %arg2[%145, %c0_i32_88] : memref<64x32xf32, #tpu.memory_space<any>> -> memref<1x32xf32, #tpu.memory_space<any>>
    %c29_i32 = arith.constant 29 : i32
    %c0_i32_89 = arith.constant 0 : i32
    %147 = tpu.memref_slice %arg6[%c29_i32, %c0_i32_89] : memref<32x32xf32, #tpu.memory_space<vmem>> -> memref<1x32xf32, #tpu.memory_space<vmem>>
    %148 = tpu.memref_slice %arg7[%c0_i32_87] : memref<1x!tpu.dma_semaphore, #tpu.memory_space<semaphore_mem>> -> memref<1x!tpu.dma_semaphore, #tpu.memory_space<semaphore_mem>>
    %149 = tpu.memref_squeeze %148 : memref<1x!tpu.dma_semaphore, #tpu.memory_space<semaphore_mem>> -> memref<!tpu.dma_semaphore, #tpu.memory_space<semaphore_mem>>
    tpu.enqueue_dma source(%146 : memref<1x32xf32, #tpu.memory_space<any>>) target(%147 : memref<1x32xf32, #tpu.memory_space<vmem>>) target_semaphore(%149 : memref<!tpu.dma_semaphore, #tpu.memory_space<semaphore_mem>>)
    %c30 = arith.constant 30 : index
    %150 = memref.load %arg1[%c30] : memref<32xi32, #tpu.memory_space<smem>>
    %c0_i32_90 = arith.constant 0 : i32
    %c0_i32_91 = arith.constant 0 : i32
    %151 = tpu.memref_slice %arg2[%150, %c0_i32_91] : memref<64x32xf32, #tpu.memory_space<any>> -> memref<1x32xf32, #tpu.memory_space<any>>
    %c30_i32 = arith.constant 30 : i32
    %c0_i32_92 = arith.constant 0 : i32
    %152 = tpu.memref_slice %arg6[%c30_i32, %c0_i32_92] : memref<32x32xf32, #tpu.memory_space<vmem>> -> memref<1x32xf32, #tpu.memory_space<vmem>>
    %153 = tpu.memref_slice %arg7[%c0_i32_90] : memref<1x!tpu.dma_semaphore, #tpu.memory_space<semaphore_mem>> -> memref<1x!tpu.dma_semaphore, #tpu.memory_space<semaphore_mem>>
    %154 = tpu.memref_squeeze %153 : memref<1x!tpu.dma_semaphore, #tpu.memory_space<semaphore_mem>> -> memref<!tpu.dma_semaphore, #tpu.memory_space<semaphore_mem>>
    tpu.enqueue_dma source(%151 : memref<1x32xf32, #tpu.memory_space<any>>) target(%152 : memref<1x32xf32, #tpu.memory_space<vmem>>) target_semaphore(%154 : memref<!tpu.dma_semaphore, #tpu.memory_space<semaphore_mem>>)
    %c31 = arith.constant 31 : index
    %155 = memref.load %arg1[%c31] : memref<32xi32, #tpu.memory_space<smem>>
    %c0_i32_93 = arith.constant 0 : i32
    %c0_i32_94 = arith.constant 0 : i32
    %156 = tpu.memref_slice %arg2[%155, %c0_i32_94] : memref<64x32xf32, #tpu.memory_space<any>> -> memref<1x32xf32, #tpu.memory_space<any>>
    %c31_i32 = arith.constant 31 : i32
    %c0_i32_95 = arith.constant 0 : i32
    %157 = tpu.memref_slice %arg6[%c31_i32, %c0_i32_95] : memref<32x32xf32, #tpu.memory_space<vmem>> -> memref<1x32xf32, #tpu.memory_space<vmem>>
    %158 = tpu.memref_slice %arg7[%c0_i32_93] : memref<1x!tpu.dma_semaphore, #tpu.memory_space<semaphore_mem>> -> memref<1x!tpu.dma_semaphore, #tpu.memory_space<semaphore_mem>>
    %159 = tpu.memref_squeeze %158 : memref<1x!tpu.dma_semaphore, #tpu.memory_space<semaphore_mem>> -> memref<!tpu.dma_semaphore, #tpu.memory_space<semaphore_mem>>
    tpu.enqueue_dma source(%156 : memref<1x32xf32, #tpu.memory_space<any>>) target(%157 : memref<1x32xf32, #tpu.memory_space<vmem>>) target_semaphore(%159 : memref<!tpu.dma_semaphore, #tpu.memory_space<semaphore_mem>>)
    %c0_i32_96 = arith.constant 0 : i32
    %c0_i32_97 = arith.constant 0 : i32
    %160 = tpu.memref_slice %arg2[%0, %c0_i32_97] : memref<64x32xf32, #tpu.memory_space<any>> -> memref<1x32xf32, #tpu.memory_space<any>>
    %c0_i32_98 = arith.constant 0 : i32
    %c0_i32_99 = arith.constant 0 : i32
    %161 = tpu.memref_slice %arg6[%c0_i32_98, %c0_i32_99] : memref<32x32xf32, #tpu.memory_space<vmem>> -> memref<1x32xf32, #tpu.memory_space<vmem>>
    %162 = tpu.memref_slice %arg7[%c0_i32_96] : memref<1x!tpu.dma_semaphore, #tpu.memory_space<semaphore_mem>> -> memref<1x!tpu.dma_semaphore, #tpu.memory_space<semaphore_mem>>
    %163 = tpu.memref_squeeze %162 : memref<1x!tpu.dma_semaphore, #tpu.memory_space<semaphore_mem>> -> memref<!tpu.dma_semaphore, #tpu.memory_space<semaphore_mem>>
    tpu.wait_dma2 semaphore(%163 : memref<!tpu.dma_semaphore, #tpu.memory_space<semaphore_mem>>) src(%160 : memref<1x32xf32, #tpu.memory_space<any>>) dst(%161 : memref<1x32xf32, #tpu.memory_space<vmem>>)
    %c0_i32_100 = arith.constant 0 : i32
    %c0_i32_101 = arith.constant 0 : i32
    %164 = tpu.memref_slice %arg2[%5, %c0_i32_101] : memref<64x32xf32, #tpu.memory_space<any>> -> memref<1x32xf32, #tpu.memory_space<any>>
    %c1_i32_102 = arith.constant 1 : i32
    %c0_i32_103 = arith.constant 0 : i32
    %165 = tpu.memref_slice %arg6[%c1_i32_102, %c0_i32_103] : memref<32x32xf32, #tpu.memory_space<vmem>> -> memref<1x32xf32, #tpu.memory_space<vmem>>
    %166 = tpu.memref_slice %arg7[%c0_i32_100] : memref<1x!tpu.dma_semaphore, #tpu.memory_space<semaphore_mem>> -> memref<1x!tpu.dma_semaphore, #tpu.memory_space<semaphore_mem>>
    %167 = tpu.memref_squeeze %166 : memref<1x!tpu.dma_semaphore, #tpu.memory_space<semaphore_mem>> -> memref<!tpu.dma_semaphore, #tpu.memory_space<semaphore_mem>>
    tpu.wait_dma2 semaphore(%167 : memref<!tpu.dma_semaphore, #tpu.memory_space<semaphore_mem>>) src(%164 : memref<1x32xf32, #tpu.memory_space<any>>) dst(%165 : memref<1x32xf32, #tpu.memory_space<vmem>>)
    %c0_i32_104 = arith.constant 0 : i32
    %c0_i32_105 = arith.constant 0 : i32
    %168 = tpu.memref_slice %arg2[%10, %c0_i32_105] : memref<64x32xf32, #tpu.memory_space<any>> -> memref<1x32xf32, #tpu.memory_space<any>>
    %c2_i32_106 = arith.constant 2 : i32
    %c0_i32_107 = arith.constant 0 : i32
    %169 = tpu.memref_slice %arg6[%c2_i32_106, %c0_i32_107] : memref<32x32xf32, #tpu.memory_space<vmem>> -> memref<1x32xf32, #tpu.memory_space<vmem>>
    %170 = tpu.memref_slice %arg7[%c0_i32_104] : memref<1x!tpu.dma_semaphore, #tpu.memory_space<semaphore_mem>> -> memref<1x!tpu.dma_semaphore, #tpu.memory_space<semaphore_mem>>
    %171 = tpu.memref_squeeze %170 : memref<1x!tpu.dma_semaphore, #tpu.memory_space<semaphore_mem>> -> memref<!tpu.dma_semaphore, #tpu.memory_space<semaphore_mem>>
    tpu.wait_dma2 semaphore(%171 : memref<!tpu.dma_semaphore, #tpu.memory_space<semaphore_mem>>) src(%168 : memref<1x32xf32, #tpu.memory_space<any>>) dst(%169 : memref<1x32xf32, #tpu.memory_space<vmem>>)
    %c0_i32_108 = arith.constant 0 : i32
    %c0_i32_109 = arith.constant 0 : i32
    %172 = tpu.memref_slice %arg2[%15, %c0_i32_109] : memref<64x32xf32, #tpu.memory_space<any>> -> memref<1x32xf32, #tpu.memory_space<any>>
    %c3_i32_110 = arith.constant 3 : i32
    %c0_i32_111 = arith.constant 0 : i32
    %173 = tpu.memref_slice %arg6[%c3_i32_110, %c0_i32_111] : memref<32x32xf32, #tpu.memory_space<vmem>> -> memref<1x32xf32, #tpu.memory_space<vmem>>
    %174 = tpu.memref_slice %arg7[%c0_i32_108] : memref<1x!tpu.dma_semaphore, #tpu.memory_space<semaphore_mem>> -> memref<1x!tpu.dma_semaphore, #tpu.memory_space<semaphore_mem>>
    %175 = tpu.memref_squeeze %174 : memref<1x!tpu.dma_semaphore, #tpu.memory_space<semaphore_mem>> -> memref<!tpu.dma_semaphore, #tpu.memory_space<semaphore_mem>>
    tpu.wait_dma2 semaphore(%175 : memref<!tpu.dma_semaphore, #tpu.memory_space<semaphore_mem>>) src(%172 : memref<1x32xf32, #tpu.memory_space<any>>) dst(%173 : memref<1x32xf32, #tpu.memory_space<vmem>>)
    %c0_i32_112 = arith.constant 0 : i32
    %c0_i32_113 = arith.constant 0 : i32
    %176 = tpu.memref_slice %arg2[%20, %c0_i32_113] : memref<64x32xf32, #tpu.memory_space<any>> -> memref<1x32xf32, #tpu.memory_space<any>>
    %c4_i32_114 = arith.constant 4 : i32
    %c0_i32_115 = arith.constant 0 : i32
    %177 = tpu.memref_slice %arg6[%c4_i32_114, %c0_i32_115] : memref<32x32xf32, #tpu.memory_space<vmem>> -> memref<1x32xf32, #tpu.memory_space<vmem>>
    %178 = tpu.memref_slice %arg7[%c0_i32_112] : memref<1x!tpu.dma_semaphore, #tpu.memory_space<semaphore_mem>> -> memref<1x!tpu.dma_semaphore, #tpu.memory_space<semaphore_mem>>
    %179 = tpu.memref_squeeze %178 : memref<1x!tpu.dma_semaphore, #tpu.memory_space<semaphore_mem>> -> memref<!tpu.dma_semaphore, #tpu.memory_space<semaphore_mem>>
    tpu.wait_dma2 semaphore(%179 : memref<!tpu.dma_semaphore, #tpu.memory_space<semaphore_mem>>) src(%176 : memref<1x32xf32, #tpu.memory_space<any>>) dst(%177 : memref<1x32xf32, #tpu.memory_space<vmem>>)
    %c0_i32_116 = arith.constant 0 : i32
    %c0_i32_117 = arith.constant 0 : i32
    %180 = tpu.memref_slice %arg2[%25, %c0_i32_117] : memref<64x32xf32, #tpu.memory_space<any>> -> memref<1x32xf32, #tpu.memory_space<any>>
    %c5_i32_118 = arith.constant 5 : i32
    %c0_i32_119 = arith.constant 0 : i32
    %181 = tpu.memref_slice %arg6[%c5_i32_118, %c0_i32_119] : memref<32x32xf32, #tpu.memory_space<vmem>> -> memref<1x32xf32, #tpu.memory_space<vmem>>
    %182 = tpu.memref_slice %arg7[%c0_i32_116] : memref<1x!tpu.dma_semaphore, #tpu.memory_space<semaphore_mem>> -> memref<1x!tpu.dma_semaphore, #tpu.memory_space<semaphore_mem>>
    %183 = tpu.memref_squeeze %182 : memref<1x!tpu.dma_semaphore, #tpu.memory_space<semaphore_mem>> -> memref<!tpu.dma_semaphore, #tpu.memory_space<semaphore_mem>>
    tpu.wait_dma2 semaphore(%183 : memref<!tpu.dma_semaphore, #tpu.memory_space<semaphore_mem>>) src(%180 : memref<1x32xf32, #tpu.memory_space<any>>) dst(%181 : memref<1x32xf32, #tpu.memory_space<vmem>>)
    %c0_i32_120 = arith.constant 0 : i32
    %c0_i32_121 = arith.constant 0 : i32
    %184 = tpu.memref_slice %arg2[%30, %c0_i32_121] : memref<64x32xf32, #tpu.memory_space<any>> -> memref<1x32xf32, #tpu.memory_space<any>>
    %c6_i32_122 = arith.constant 6 : i32
    %c0_i32_123 = arith.constant 0 : i32
    %185 = tpu.memref_slice %arg6[%c6_i32_122, %c0_i32_123] : memref<32x32xf32, #tpu.memory_space<vmem>> -> memref<1x32xf32, #tpu.memory_space<vmem>>
    %186 = tpu.memref_slice %arg7[%c0_i32_120] : memref<1x!tpu.dma_semaphore, #tpu.memory_space<semaphore_mem>> -> memref<1x!tpu.dma_semaphore, #tpu.memory_space<semaphore_mem>>
    %187 = tpu.memref_squeeze %186 : memref<1x!tpu.dma_semaphore, #tpu.memory_space<semaphore_mem>> -> memref<!tpu.dma_semaphore, #tpu.memory_space<semaphore_mem>>
    tpu.wait_dma2 semaphore(%187 : memref<!tpu.dma_semaphore, #tpu.memory_space<semaphore_mem>>) src(%184 : memref<1x32xf32, #tpu.memory_space<any>>) dst(%185 : memref<1x32xf32, #tpu.memory_space<vmem>>)
    %c0_i32_124 = arith.constant 0 : i32
    %c0_i32_125 = arith.constant 0 : i32
    %188 = tpu.memref_slice %arg2[%35, %c0_i32_125] : memref<64x32xf32, #tpu.memory_space<any>> -> memref<1x32xf32, #tpu.memory_space<any>>
    %c7_i32_126 = arith.constant 7 : i32
    %c0_i32_127 = arith.constant 0 : i32
    %189 = tpu.memref_slice %arg6[%c7_i32_126, %c0_i32_127] : memref<32x32xf32, #tpu.memory_space<vmem>> -> memref<1x32xf32, #tpu.memory_space<vmem>>
    %190 = tpu.memref_slice %arg7[%c0_i32_124] : memref<1x!tpu.dma_semaphore, #tpu.memory_space<semaphore_mem>> -> memref<1x!tpu.dma_semaphore, #tpu.memory_space<semaphore_mem>>
    %191 = tpu.memref_squeeze %190 : memref<1x!tpu.dma_semaphore, #tpu.memory_space<semaphore_mem>> -> memref<!tpu.dma_semaphore, #tpu.memory_space<semaphore_mem>>
    tpu.wait_dma2 semaphore(%191 : memref<!tpu.dma_semaphore, #tpu.memory_space<semaphore_mem>>) src(%188 : memref<1x32xf32, #tpu.memory_space<any>>) dst(%189 : memref<1x32xf32, #tpu.memory_space<vmem>>)
    %c0_i32_128 = arith.constant 0 : i32
    %c0_i32_129 = arith.constant 0 : i32
    %192 = tpu.memref_slice %arg2[%40, %c0_i32_129] : memref<64x32xf32, #tpu.memory_space<any>> -> memref<1x32xf32, #tpu.memory_space<any>>
    %c8_i32_130 = arith.constant 8 : i32
    %c0_i32_131 = arith.constant 0 : i32
    %193 = tpu.memref_slice %arg6[%c8_i32_130, %c0_i32_131] : memref<32x32xf32, #tpu.memory_space<vmem>> -> memref<1x32xf32, #tpu.memory_space<vmem>>
    %194 = tpu.memref_slice %arg7[%c0_i32_128] : memref<1x!tpu.dma_semaphore, #tpu.memory_space<semaphore_mem>> -> memref<1x!tpu.dma_semaphore, #tpu.memory_space<semaphore_mem>>
    %195 = tpu.memref_squeeze %194 : memref<1x!tpu.dma_semaphore, #tpu.memory_space<semaphore_mem>> -> memref<!tpu.dma_semaphore, #tpu.memory_space<semaphore_mem>>
    tpu.wait_dma2 semaphore(%195 : memref<!tpu.dma_semaphore, #tpu.memory_space<semaphore_mem>>) src(%192 : memref<1x32xf32, #tpu.memory_space<any>>) dst(%193 : memref<1x32xf32, #tpu.memory_space<vmem>>)
    %c0_i32_132 = arith.constant 0 : i32
    %c0_i32_133 = arith.constant 0 : i32
    %196 = tpu.memref_slice %arg2[%45, %c0_i32_133] : memref<64x32xf32, #tpu.memory_space<any>> -> memref<1x32xf32, #tpu.memory_space<any>>
    %c9_i32_134 = arith.constant 9 : i32
    %c0_i32_135 = arith.constant 0 : i32
    %197 = tpu.memref_slice %arg6[%c9_i32_134, %c0_i32_135] : memref<32x32xf32, #tpu.memory_space<vmem>> -> memref<1x32xf32, #tpu.memory_space<vmem>>
    %198 = tpu.memref_slice %arg7[%c0_i32_132] : memref<1x!tpu.dma_semaphore, #tpu.memory_space<semaphore_mem>> -> memref<1x!tpu.dma_semaphore, #tpu.memory_space<semaphore_mem>>
    %199 = tpu.memref_squeeze %198 : memref<1x!tpu.dma_semaphore, #tpu.memory_space<semaphore_mem>> -> memref<!tpu.dma_semaphore, #tpu.memory_space<semaphore_mem>>
    tpu.wait_dma2 semaphore(%199 : memref<!tpu.dma_semaphore, #tpu.memory_space<semaphore_mem>>) src(%196 : memref<1x32xf32, #tpu.memory_space<any>>) dst(%197 : memref<1x32xf32, #tpu.memory_space<vmem>>)
    %c0_i32_136 = arith.constant 0 : i32
    %c0_i32_137 = arith.constant 0 : i32
    %200 = tpu.memref_slice %arg2[%50, %c0_i32_137] : memref<64x32xf32, #tpu.memory_space<any>> -> memref<1x32xf32, #tpu.memory_space<any>>
    %c10_i32_138 = arith.constant 10 : i32
    %c0_i32_139 = arith.constant 0 : i32
    %201 = tpu.memref_slice %arg6[%c10_i32_138, %c0_i32_139] : memref<32x32xf32, #tpu.memory_space<vmem>> -> memref<1x32xf32, #tpu.memory_space<vmem>>
    %202 = tpu.memref_slice %arg7[%c0_i32_136] : memref<1x!tpu.dma_semaphore, #tpu.memory_space<semaphore_mem>> -> memref<1x!tpu.dma_semaphore, #tpu.memory_space<semaphore_mem>>
    %203 = tpu.memref_squeeze %202 : memref<1x!tpu.dma_semaphore, #tpu.memory_space<semaphore_mem>> -> memref<!tpu.dma_semaphore, #tpu.memory_space<semaphore_mem>>
    tpu.wait_dma2 semaphore(%203 : memref<!tpu.dma_semaphore, #tpu.memory_space<semaphore_mem>>) src(%200 : memref<1x32xf32, #tpu.memory_space<any>>) dst(%201 : memref<1x32xf32, #tpu.memory_space<vmem>>)
    %c0_i32_140 = arith.constant 0 : i32
    %c0_i32_141 = arith.constant 0 : i32
    %204 = tpu.memref_slice %arg2[%55, %c0_i32_141] : memref<64x32xf32, #tpu.memory_space<any>> -> memref<1x32xf32, #tpu.memory_space<any>>
    %c11_i32_142 = arith.constant 11 : i32
    %c0_i32_143 = arith.constant 0 : i32
    %205 = tpu.memref_slice %arg6[%c11_i32_142, %c0_i32_143] : memref<32x32xf32, #tpu.memory_space<vmem>> -> memref<1x32xf32, #tpu.memory_space<vmem>>
    %206 = tpu.memref_slice %arg7[%c0_i32_140] : memref<1x!tpu.dma_semaphore, #tpu.memory_space<semaphore_mem>> -> memref<1x!tpu.dma_semaphore, #tpu.memory_space<semaphore_mem>>
    %207 = tpu.memref_squeeze %206 : memref<1x!tpu.dma_semaphore, #tpu.memory_space<semaphore_mem>> -> memref<!tpu.dma_semaphore, #tpu.memory_space<semaphore_mem>>
    tpu.wait_dma2 semaphore(%207 : memref<!tpu.dma_semaphore, #tpu.memory_space<semaphore_mem>>) src(%204 : memref<1x32xf32, #tpu.memory_space<any>>) dst(%205 : memref<1x32xf32, #tpu.memory_space<vmem>>)
    %c0_i32_144 = arith.constant 0 : i32
    %c0_i32_145 = arith.constant 0 : i32
    %208 = tpu.memref_slice %arg2[%60, %c0_i32_145] : memref<64x32xf32, #tpu.memory_space<any>> -> memref<1x32xf32, #tpu.memory_space<any>>
    %c12_i32_146 = arith.constant 12 : i32
    %c0_i32_147 = arith.constant 0 : i32
    %209 = tpu.memref_slice %arg6[%c12_i32_146, %c0_i32_147] : memref<32x32xf32, #tpu.memory_space<vmem>> -> memref<1x32xf32, #tpu.memory_space<vmem>>
    %210 = tpu.memref_slice %arg7[%c0_i32_144] : memref<1x!tpu.dma_semaphore, #tpu.memory_space<semaphore_mem>> -> memref<1x!tpu.dma_semaphore, #tpu.memory_space<semaphore_mem>>
    %211 = tpu.memref_squeeze %210 : memref<1x!tpu.dma_semaphore, #tpu.memory_space<semaphore_mem>> -> memref<!tpu.dma_semaphore, #tpu.memory_space<semaphore_mem>>
    tpu.wait_dma2 semaphore(%211 : memref<!tpu.dma_semaphore, #tpu.memory_space<semaphore_mem>>) src(%208 : memref<1x32xf32, #tpu.memory_space<any>>) dst(%209 : memref<1x32xf32, #tpu.memory_space<vmem>>)
    %c0_i32_148 = arith.constant 0 : i32
    %c0_i32_149 = arith.constant 0 : i32
    %212 = tpu.memref_slice %arg2[%65, %c0_i32_149] : memref<64x32xf32, #tpu.memory_space<any>> -> memref<1x32xf32, #tpu.memory_space<any>>
    %c13_i32_150 = arith.constant 13 : i32
    %c0_i32_151 = arith.constant 0 : i32
    %213 = tpu.memref_slice %arg6[%c13_i32_150, %c0_i32_151] : memref<32x32xf32, #tpu.memory_space<vmem>> -> memref<1x32xf32, #tpu.memory_space<vmem>>
    %214 = tpu.memref_slice %arg7[%c0_i32_148] : memref<1x!tpu.dma_semaphore, #tpu.memory_space<semaphore_mem>> -> memref<1x!tpu.dma_semaphore, #tpu.memory_space<semaphore_mem>>
    %215 = tpu.memref_squeeze %214 : memref<1x!tpu.dma_semaphore, #tpu.memory_space<semaphore_mem>> -> memref<!tpu.dma_semaphore, #tpu.memory_space<semaphore_mem>>
    tpu.wait_dma2 semaphore(%215 : memref<!tpu.dma_semaphore, #tpu.memory_space<semaphore_mem>>) src(%212 : memref<1x32xf32, #tpu.memory_space<any>>) dst(%213 : memref<1x32xf32, #tpu.memory_space<vmem>>)
    %c0_i32_152 = arith.constant 0 : i32
    %c0_i32_153 = arith.constant 0 : i32
    %216 = tpu.memref_slice %arg2[%70, %c0_i32_153] : memref<64x32xf32, #tpu.memory_space<any>> -> memref<1x32xf32, #tpu.memory_space<any>>
    %c14_i32_154 = arith.constant 14 : i32
    %c0_i32_155 = arith.constant 0 : i32
    %217 = tpu.memref_slice %arg6[%c14_i32_154, %c0_i32_155] : memref<32x32xf32, #tpu.memory_space<vmem>> -> memref<1x32xf32, #tpu.memory_space<vmem>>
    %218 = tpu.memref_slice %arg7[%c0_i32_152] : memref<1x!tpu.dma_semaphore, #tpu.memory_space<semaphore_mem>> -> memref<1x!tpu.dma_semaphore, #tpu.memory_space<semaphore_mem>>
    %219 = tpu.memref_squeeze %218 : memref<1x!tpu.dma_semaphore, #tpu.memory_space<semaphore_mem>> -> memref<!tpu.dma_semaphore, #tpu.memory_space<semaphore_mem>>
    tpu.wait_dma2 semaphore(%219 : memref<!tpu.dma_semaphore, #tpu.memory_space<semaphore_mem>>) src(%216 : memref<1x32xf32, #tpu.memory_space<any>>) dst(%217 : memref<1x32xf32, #tpu.memory_space<vmem>>)
    %c0_i32_156 = arith.constant 0 : i32
    %c0_i32_157 = arith.constant 0 : i32
    %220 = tpu.memref_slice %arg2[%75, %c0_i32_157] : memref<64x32xf32, #tpu.memory_space<any>> -> memref<1x32xf32, #tpu.memory_space<any>>
    %c15_i32_158 = arith.constant 15 : i32
    %c0_i32_159 = arith.constant 0 : i32
    %221 = tpu.memref_slice %arg6[%c15_i32_158, %c0_i32_159] : memref<32x32xf32, #tpu.memory_space<vmem>> -> memref<1x32xf32, #tpu.memory_space<vmem>>
    %222 = tpu.memref_slice %arg7[%c0_i32_156] : memref<1x!tpu.dma_semaphore, #tpu.memory_space<semaphore_mem>> -> memref<1x!tpu.dma_semaphore, #tpu.memory_space<semaphore_mem>>
    %223 = tpu.memref_squeeze %222 : memref<1x!tpu.dma_semaphore, #tpu.memory_space<semaphore_mem>> -> memref<!tpu.dma_semaphore, #tpu.memory_space<semaphore_mem>>
    tpu.wait_dma2 semaphore(%223 : memref<!tpu.dma_semaphore, #tpu.memory_space<semaphore_mem>>) src(%220 : memref<1x32xf32, #tpu.memory_space<any>>) dst(%221 : memref<1x32xf32, #tpu.memory_space<vmem>>)
    %c0_i32_160 = arith.constant 0 : i32
    %c0_i32_161 = arith.constant 0 : i32
    %224 = tpu.memref_slice %arg2[%80, %c0_i32_161] : memref<64x32xf32, #tpu.memory_space<any>> -> memref<1x32xf32, #tpu.memory_space<any>>
    %c16_i32_162 = arith.constant 16 : i32
    %c0_i32_163 = arith.constant 0 : i32
    %225 = tpu.memref_slice %arg6[%c16_i32_162, %c0_i32_163] : memref<32x32xf32, #tpu.memory_space<vmem>> -> memref<1x32xf32, #tpu.memory_space<vmem>>
    %226 = tpu.memref_slice %arg7[%c0_i32_160] : memref<1x!tpu.dma_semaphore, #tpu.memory_space<semaphore_mem>> -> memref<1x!tpu.dma_semaphore, #tpu.memory_space<semaphore_mem>>
    %227 = tpu.memref_squeeze %226 : memref<1x!tpu.dma_semaphore, #tpu.memory_space<semaphore_mem>> -> memref<!tpu.dma_semaphore, #tpu.memory_space<semaphore_mem>>
    tpu.wait_dma2 semaphore(%227 : memref<!tpu.dma_semaphore, #tpu.memory_space<semaphore_mem>>) src(%224 : memref<1x32xf32, #tpu.memory_space<any>>) dst(%225 : memref<1x32xf32, #tpu.memory_space<vmem>>)
    %c0_i32_164 = arith.constant 0 : i32
    %c0_i32_165 = arith.constant 0 : i32
    %228 = tpu.memref_slice %arg2[%85, %c0_i32_165] : memref<64x32xf32, #tpu.memory_space<any>> -> memref<1x32xf32, #tpu.memory_space<any>>
    %c17_i32_166 = arith.constant 17 : i32
    %c0_i32_167 = arith.constant 0 : i32
    %229 = tpu.memref_slice %arg6[%c17_i32_166, %c0_i32_167] : memref<32x32xf32, #tpu.memory_space<vmem>> -> memref<1x32xf32, #tpu.memory_space<vmem>>
    %230 = tpu.memref_slice %arg7[%c0_i32_164] : memref<1x!tpu.dma_semaphore, #tpu.memory_space<semaphore_mem>> -> memref<1x!tpu.dma_semaphore, #tpu.memory_space<semaphore_mem>>
    %231 = tpu.memref_squeeze %230 : memref<1x!tpu.dma_semaphore, #tpu.memory_space<semaphore_mem>> -> memref<!tpu.dma_semaphore, #tpu.memory_space<semaphore_mem>>
    tpu.wait_dma2 semaphore(%231 : memref<!tpu.dma_semaphore, #tpu.memory_space<semaphore_mem>>) src(%228 : memref<1x32xf32, #tpu.memory_space<any>>) dst(%229 : memref<1x32xf32, #tpu.memory_space<vmem>>)
    %c0_i32_168 = arith.constant 0 : i32
    %c0_i32_169 = arith.constant 0 : i32
    %232 = tpu.memref_slice %arg2[%90, %c0_i32_169] : memref<64x32xf32, #tpu.memory_space<any>> -> memref<1x32xf32, #tpu.memory_space<any>>
    %c18_i32_170 = arith.constant 18 : i32
    %c0_i32_171 = arith.constant 0 : i32
    %233 = tpu.memref_slice %arg6[%c18_i32_170, %c0_i32_171] : memref<32x32xf32, #tpu.memory_space<vmem>> -> memref<1x32xf32, #tpu.memory_space<vmem>>
    %234 = tpu.memref_slice %arg7[%c0_i32_168] : memref<1x!tpu.dma_semaphore, #tpu.memory_space<semaphore_mem>> -> memref<1x!tpu.dma_semaphore, #tpu.memory_space<semaphore_mem>>
    %235 = tpu.memref_squeeze %234 : memref<1x!tpu.dma_semaphore, #tpu.memory_space<semaphore_mem>> -> memref<!tpu.dma_semaphore, #tpu.memory_space<semaphore_mem>>
    tpu.wait_dma2 semaphore(%235 : memref<!tpu.dma_semaphore, #tpu.memory_space<semaphore_mem>>) src(%232 : memref<1x32xf32, #tpu.memory_space<any>>) dst(%233 : memref<1x32xf32, #tpu.memory_space<vmem>>)
    %c0_i32_172 = arith.constant 0 : i32
    %c0_i32_173 = arith.constant 0 : i32
    %236 = tpu.memref_slice %arg2[%95, %c0_i32_173] : memref<64x32xf32, #tpu.memory_space<any>> -> memref<1x32xf32, #tpu.memory_space<any>>
    %c19_i32_174 = arith.constant 19 : i32
    %c0_i32_175 = arith.constant 0 : i32
    %237 = tpu.memref_slice %arg6[%c19_i32_174, %c0_i32_175] : memref<32x32xf32, #tpu.memory_space<vmem>> -> memref<1x32xf32, #tpu.memory_space<vmem>>
    %238 = tpu.memref_slice %arg7[%c0_i32_172] : memref<1x!tpu.dma_semaphore, #tpu.memory_space<semaphore_mem>> -> memref<1x!tpu.dma_semaphore, #tpu.memory_space<semaphore_mem>>
    %239 = tpu.memref_squeeze %238 : memref<1x!tpu.dma_semaphore, #tpu.memory_space<semaphore_mem>> -> memref<!tpu.dma_semaphore, #tpu.memory_space<semaphore_mem>>
    tpu.wait_dma2 semaphore(%239 : memref<!tpu.dma_semaphore, #tpu.memory_space<semaphore_mem>>) src(%236 : memref<1x32xf32, #tpu.memory_space<any>>) dst(%237 : memref<1x32xf32, #tpu.memory_space<vmem>>)
    %c0_i32_176 = arith.constant 0 : i32
    %c0_i32_177 = arith.constant 0 : i32
    %240 = tpu.memref_slice %arg2[%100, %c0_i32_177] : memref<64x32xf32, #tpu.memory_space<any>> -> memref<1x32xf32, #tpu.memory_space<any>>
    %c20_i32_178 = arith.constant 20 : i32
    %c0_i32_179 = arith.constant 0 : i32
    %241 = tpu.memref_slice %arg6[%c20_i32_178, %c0_i32_179] : memref<32x32xf32, #tpu.memory_space<vmem>> -> memref<1x32xf32, #tpu.memory_space<vmem>>
    %242 = tpu.memref_slice %arg7[%c0_i32_176] : memref<1x!tpu.dma_semaphore, #tpu.memory_space<semaphore_mem>> -> memref<1x!tpu.dma_semaphore, #tpu.memory_space<semaphore_mem>>
    %243 = tpu.memref_squeeze %242 : memref<1x!tpu.dma_semaphore, #tpu.memory_space<semaphore_mem>> -> memref<!tpu.dma_semaphore, #tpu.memory_space<semaphore_mem>>
    tpu.wait_dma2 semaphore(%243 : memref<!tpu.dma_semaphore, #tpu.memory_space<semaphore_mem>>) src(%240 : memref<1x32xf32, #tpu.memory_space<any>>) dst(%241 : memref<1x32xf32, #tpu.memory_space<vmem>>)
    %c0_i32_180 = arith.constant 0 : i32
    %c0_i32_181 = arith.constant 0 : i32
    %244 = tpu.memref_slice %arg2[%105, %c0_i32_181] : memref<64x32xf32, #tpu.memory_space<any>> -> memref<1x32xf32, #tpu.memory_space<any>>
    %c21_i32_182 = arith.constant 21 : i32
    %c0_i32_183 = arith.constant 0 : i32
    %245 = tpu.memref_slice %arg6[%c21_i32_182, %c0_i32_183] : memref<32x32xf32, #tpu.memory_space<vmem>> -> memref<1x32xf32, #tpu.memory_space<vmem>>
    %246 = tpu.memref_slice %arg7[%c0_i32_180] : memref<1x!tpu.dma_semaphore, #tpu.memory_space<semaphore_mem>> -> memref<1x!tpu.dma_semaphore, #tpu.memory_space<semaphore_mem>>
    %247 = tpu.memref_squeeze %246 : memref<1x!tpu.dma_semaphore, #tpu.memory_space<semaphore_mem>> -> memref<!tpu.dma_semaphore, #tpu.memory_space<semaphore_mem>>
    tpu.wait_dma2 semaphore(%247 : memref<!tpu.dma_semaphore, #tpu.memory_space<semaphore_mem>>) src(%244 : memref<1x32xf32, #tpu.memory_space<any>>) dst(%245 : memref<1x32xf32, #tpu.memory_space<vmem>>)
    %c0_i32_184 = arith.constant 0 : i32
    %c0_i32_185 = arith.constant 0 : i32
    %248 = tpu.memref_slice %arg2[%110, %c0_i32_185] : memref<64x32xf32, #tpu.memory_space<any>> -> memref<1x32xf32, #tpu.memory_space<any>>
    %c22_i32_186 = arith.constant 22 : i32
    %c0_i32_187 = arith.constant 0 : i32
    %249 = tpu.memref_slice %arg6[%c22_i32_186, %c0_i32_187] : memref<32x32xf32, #tpu.memory_space<vmem>> -> memref<1x32xf32, #tpu.memory_space<vmem>>
    %250 = tpu.memref_slice %arg7[%c0_i32_184] : memref<1x!tpu.dma_semaphore, #tpu.memory_space<semaphore_mem>> -> memref<1x!tpu.dma_semaphore, #tpu.memory_space<semaphore_mem>>
    %251 = tpu.memref_squeeze %250 : memref<1x!tpu.dma_semaphore, #tpu.memory_space<semaphore_mem>> -> memref<!tpu.dma_semaphore, #tpu.memory_space<semaphore_mem>>
    tpu.wait_dma2 semaphore(%251 : memref<!tpu.dma_semaphore, #tpu.memory_space<semaphore_mem>>) src(%248 : memref<1x32xf32, #tpu.memory_space<any>>) dst(%249 : memref<1x32xf32, #tpu.memory_space<vmem>>)
    %c0_i32_188 = arith.constant 0 : i32
    %c0_i32_189 = arith.constant 0 : i32
    %252 = tpu.memref_slice %arg2[%115, %c0_i32_189] : memref<64x32xf32, #tpu.memory_space<any>> -> memref<1x32xf32, #tpu.memory_space<any>>
    %c23_i32_190 = arith.constant 23 : i32
    %c0_i32_191 = arith.constant 0 : i32
    %253 = tpu.memref_slice %arg6[%c23_i32_190, %c0_i32_191] : memref<32x32xf32, #tpu.memory_space<vmem>> -> memref<1x32xf32, #tpu.memory_space<vmem>>
    %254 = tpu.memref_slice %arg7[%c0_i32_188] : memref<1x!tpu.dma_semaphore, #tpu.memory_space<semaphore_mem>> -> memref<1x!tpu.dma_semaphore, #tpu.memory_space<semaphore_mem>>
    %255 = tpu.memref_squeeze %254 : memref<1x!tpu.dma_semaphore, #tpu.memory_space<semaphore_mem>> -> memref<!tpu.dma_semaphore, #tpu.memory_space<semaphore_mem>>
    tpu.wait_dma2 semaphore(%255 : memref<!tpu.dma_semaphore, #tpu.memory_space<semaphore_mem>>) src(%252 : memref<1x32xf32, #tpu.memory_space<any>>) dst(%253 : memref<1x32xf32, #tpu.memory_space<vmem>>)
    %c0_i32_192 = arith.constant 0 : i32
    %c0_i32_193 = arith.constant 0 : i32
    %256 = tpu.memref_slice %arg2[%120, %c0_i32_193] : memref<64x32xf32, #tpu.memory_space<any>> -> memref<1x32xf32, #tpu.memory_space<any>>
    %c24_i32_194 = arith.constant 24 : i32
    %c0_i32_195 = arith.constant 0 : i32
    %257 = tpu.memref_slice %arg6[%c24_i32_194, %c0_i32_195] : memref<32x32xf32, #tpu.memory_space<vmem>> -> memref<1x32xf32, #tpu.memory_space<vmem>>
    %258 = tpu.memref_slice %arg7[%c0_i32_192] : memref<1x!tpu.dma_semaphore, #tpu.memory_space<semaphore_mem>> -> memref<1x!tpu.dma_semaphore, #tpu.memory_space<semaphore_mem>>
    %259 = tpu.memref_squeeze %258 : memref<1x!tpu.dma_semaphore, #tpu.memory_space<semaphore_mem>> -> memref<!tpu.dma_semaphore, #tpu.memory_space<semaphore_mem>>
    tpu.wait_dma2 semaphore(%259 : memref<!tpu.dma_semaphore, #tpu.memory_space<semaphore_mem>>) src(%256 : memref<1x32xf32, #tpu.memory_space<any>>) dst(%257 : memref<1x32xf32, #tpu.memory_space<vmem>>)
    %c0_i32_196 = arith.constant 0 : i32
    %c0_i32_197 = arith.constant 0 : i32
    %260 = tpu.memref_slice %arg2[%125, %c0_i32_197] : memref<64x32xf32, #tpu.memory_space<any>> -> memref<1x32xf32, #tpu.memory_space<any>>
    %c25_i32_198 = arith.constant 25 : i32
    %c0_i32_199 = arith.constant 0 : i32
    %261 = tpu.memref_slice %arg6[%c25_i32_198, %c0_i32_199] : memref<32x32xf32, #tpu.memory_space<vmem>> -> memref<1x32xf32, #tpu.memory_space<vmem>>
    %262 = tpu.memref_slice %arg7[%c0_i32_196] : memref<1x!tpu.dma_semaphore, #tpu.memory_space<semaphore_mem>> -> memref<1x!tpu.dma_semaphore, #tpu.memory_space<semaphore_mem>>
    %263 = tpu.memref_squeeze %262 : memref<1x!tpu.dma_semaphore, #tpu.memory_space<semaphore_mem>> -> memref<!tpu.dma_semaphore, #tpu.memory_space<semaphore_mem>>
    tpu.wait_dma2 semaphore(%263 : memref<!tpu.dma_semaphore, #tpu.memory_space<semaphore_mem>>) src(%260 : memref<1x32xf32, #tpu.memory_space<any>>) dst(%261 : memref<1x32xf32, #tpu.memory_space<vmem>>)
    %c0_i32_200 = arith.constant 0 : i32
    %c0_i32_201 = arith.constant 0 : i32
    %264 = tpu.memref_slice %arg2[%130, %c0_i32_201] : memref<64x32xf32, #tpu.memory_space<any>> -> memref<1x32xf32, #tpu.memory_space<any>>
    %c26_i32_202 = arith.constant 26 : i32
    %c0_i32_203 = arith.constant 0 : i32
    %265 = tpu.memref_slice %arg6[%c26_i32_202, %c0_i32_203] : memref<32x32xf32, #tpu.memory_space<vmem>> -> memref<1x32xf32, #tpu.memory_space<vmem>>
    %266 = tpu.memref_slice %arg7[%c0_i32_200] : memref<1x!tpu.dma_semaphore, #tpu.memory_space<semaphore_mem>> -> memref<1x!tpu.dma_semaphore, #tpu.memory_space<semaphore_mem>>
    %267 = tpu.memref_squeeze %266 : memref<1x!tpu.dma_semaphore, #tpu.memory_space<semaphore_mem>> -> memref<!tpu.dma_semaphore, #tpu.memory_space<semaphore_mem>>
    tpu.wait_dma2 semaphore(%267 : memref<!tpu.dma_semaphore, #tpu.memory_space<semaphore_mem>>) src(%264 : memref<1x32xf32, #tpu.memory_space<any>>) dst(%265 : memref<1x32xf32, #tpu.memory_space<vmem>>)
    %c0_i32_204 = arith.constant 0 : i32
    %c0_i32_205 = arith.constant 0 : i32
    %268 = tpu.memref_slice %arg2[%135, %c0_i32_205] : memref<64x32xf32, #tpu.memory_space<any>> -> memref<1x32xf32, #tpu.memory_space<any>>
    %c27_i32_206 = arith.constant 27 : i32
    %c0_i32_207 = arith.constant 0 : i32
    %269 = tpu.memref_slice %arg6[%c27_i32_206, %c0_i32_207] : memref<32x32xf32, #tpu.memory_space<vmem>> -> memref<1x32xf32, #tpu.memory_space<vmem>>
    %270 = tpu.memref_slice %arg7[%c0_i32_204] : memref<1x!tpu.dma_semaphore, #tpu.memory_space<semaphore_mem>> -> memref<1x!tpu.dma_semaphore, #tpu.memory_space<semaphore_mem>>
    %271 = tpu.memref_squeeze %270 : memref<1x!tpu.dma_semaphore, #tpu.memory_space<semaphore_mem>> -> memref<!tpu.dma_semaphore, #tpu.memory_space<semaphore_mem>>
    tpu.wait_dma2 semaphore(%271 : memref<!tpu.dma_semaphore, #tpu.memory_space<semaphore_mem>>) src(%268 : memref<1x32xf32, #tpu.memory_space<any>>) dst(%269 : memref<1x32xf32, #tpu.memory_space<vmem>>)
    %c0_i32_208 = arith.constant 0 : i32
    %c0_i32_209 = arith.constant 0 : i32
    %272 = tpu.memref_slice %arg2[%140, %c0_i32_209] : memref<64x32xf32, #tpu.memory_space<any>> -> memref<1x32xf32, #tpu.memory_space<any>>
    %c28_i32_210 = arith.constant 28 : i32
    %c0_i32_211 = arith.constant 0 : i32
    %273 = tpu.memref_slice %arg6[%c28_i32_210, %c0_i32_211] : memref<32x32xf32, #tpu.memory_space<vmem>> -> memref<1x32xf32, #tpu.memory_space<vmem>>
    %274 = tpu.memref_slice %arg7[%c0_i32_208] : memref<1x!tpu.dma_semaphore, #tpu.memory_space<semaphore_mem>> -> memref<1x!tpu.dma_semaphore, #tpu.memory_space<semaphore_mem>>
    %275 = tpu.memref_squeeze %274 : memref<1x!tpu.dma_semaphore, #tpu.memory_space<semaphore_mem>> -> memref<!tpu.dma_semaphore, #tpu.memory_space<semaphore_mem>>
    tpu.wait_dma2 semaphore(%275 : memref<!tpu.dma_semaphore, #tpu.memory_space<semaphore_mem>>) src(%272 : memref<1x32xf32, #tpu.memory_space<any>>) dst(%273 : memref<1x32xf32, #tpu.memory_space<vmem>>)
    %c0_i32_212 = arith.constant 0 : i32
    %c0_i32_213 = arith.constant 0 : i32
    %276 = tpu.memref_slice %arg2[%145, %c0_i32_213] : memref<64x32xf32, #tpu.memory_space<any>> -> memref<1x32xf32, #tpu.memory_space<any>>
    %c29_i32_214 = arith.constant 29 : i32
    %c0_i32_215 = arith.constant 0 : i32
    %277 = tpu.memref_slice %arg6[%c29_i32_214, %c0_i32_215] : memref<32x32xf32, #tpu.memory_space<vmem>> -> memref<1x32xf32, #tpu.memory_space<vmem>>
    %278 = tpu.memref_slice %arg7[%c0_i32_212] : memref<1x!tpu.dma_semaphore, #tpu.memory_space<semaphore_mem>> -> memref<1x!tpu.dma_semaphore, #tpu.memory_space<semaphore_mem>>
    %279 = tpu.memref_squeeze %278 : memref<1x!tpu.dma_semaphore, #tpu.memory_space<semaphore_mem>> -> memref<!tpu.dma_semaphore, #tpu.memory_space<semaphore_mem>>
    tpu.wait_dma2 semaphore(%279 : memref<!tpu.dma_semaphore, #tpu.memory_space<semaphore_mem>>) src(%276 : memref<1x32xf32, #tpu.memory_space<any>>) dst(%277 : memref<1x32xf32, #tpu.memory_space<vmem>>)
    %c0_i32_216 = arith.constant 0 : i32
    %c0_i32_217 = arith.constant 0 : i32
    %280 = tpu.memref_slice %arg2[%150, %c0_i32_217] : memref<64x32xf32, #tpu.memory_space<any>> -> memref<1x32xf32, #tpu.memory_space<any>>
    %c30_i32_218 = arith.constant 30 : i32
    %c0_i32_219 = arith.constant 0 : i32
    %281 = tpu.memref_slice %arg6[%c30_i32_218, %c0_i32_219] : memref<32x32xf32, #tpu.memory_space<vmem>> -> memref<1x32xf32, #tpu.memory_space<vmem>>
    %282 = tpu.memref_slice %arg7[%c0_i32_216] : memref<1x!tpu.dma_semaphore, #tpu.memory_space<semaphore_mem>> -> memref<1x!tpu.dma_semaphore, #tpu.memory_space<semaphore_mem>>
    %283 = tpu.memref_squeeze %282 : memref<1x!tpu.dma_semaphore, #tpu.memory_space<semaphore_mem>> -> memref<!tpu.dma_semaphore, #tpu.memory_space<semaphore_mem>>
    tpu.wait_dma2 semaphore(%283 : memref<!tpu.dma_semaphore, #tpu.memory_space<semaphore_mem>>) src(%280 : memref<1x32xf32, #tpu.memory_space<any>>) dst(%281 : memref<1x32xf32, #tpu.memory_space<vmem>>)
    %c0_i32_220 = arith.constant 0 : i32
    %c0_i32_221 = arith.constant 0 : i32
    %284 = tpu.memref_slice %arg2[%155, %c0_i32_221] : memref<64x32xf32, #tpu.memory_space<any>> -> memref<1x32xf32, #tpu.memory_space<any>>
    %c31_i32_222 = arith.constant 31 : i32
    %c0_i32_223 = arith.constant 0 : i32
    %285 = tpu.memref_slice %arg6[%c31_i32_222, %c0_i32_223] : memref<32x32xf32, #tpu.memory_space<vmem>> -> memref<1x32xf32, #tpu.memory_space<vmem>>
    %286 = tpu.memref_slice %arg7[%c0_i32_220] : memref<1x!tpu.dma_semaphore, #tpu.memory_space<semaphore_mem>> -> memref<1x!tpu.dma_semaphore, #tpu.memory_space<semaphore_mem>>
    %287 = tpu.memref_squeeze %286 : memref<1x!tpu.dma_semaphore, #tpu.memory_space<semaphore_mem>> -> memref<!tpu.dma_semaphore, #tpu.memory_space<semaphore_mem>>
    tpu.wait_dma2 semaphore(%287 : memref<!tpu.dma_semaphore, #tpu.memory_space<semaphore_mem>>) src(%284 : memref<1x32xf32, #tpu.memory_space<any>>) dst(%285 : memref<1x32xf32, #tpu.memory_space<vmem>>)
    %cst = arith.constant 0.000000e+00 : f32
    %288 = vector.broadcast %cst : f32 to vector<8x256xf32>
    %c0_224 = arith.constant 0 : index
    %c0_225 = arith.constant 0 : index
    %289 = vector.load %arg6[%c0_224, %c0_225] : memref<32x32xf32, #tpu.memory_space<vmem>>, vector<8x32xf32>
    %c0_226 = arith.constant 0 : index
    %c0_227 = arith.constant 0 : index
    %290 = vector.load %arg3[%c0_226, %c0_227] : memref<128x256xf32, #tpu.memory_space<vmem>>, vector<32x256xf32>
    %cst_228 = arith.constant dense<0.000000e+00> : vector<8x256xf32>
    %291 = tpu.matmul %289, %290, %cst_228 {dimension_numbers = #tpu.dot_dimension_numbers<[1], [0], [0], [1], [0, 0, 1, 1], [], []>} : vector<8x32xf32>, vector<32x256xf32>, vector<8x256xf32> -> vector<8x256xf32>
    %292 = arith.addf %288, %291 : vector<8x256xf32>
    %c8_229 = arith.constant 8 : index
    %c0_230 = arith.constant 0 : index
    %293 = vector.load %arg6[%c8_229, %c0_230] : memref<32x32xf32, #tpu.memory_space<vmem>>, vector<8x32xf32>
    %c32 = arith.constant 32 : index
    %c0_231 = arith.constant 0 : index
    %294 = vector.load %arg3[%c32, %c0_231] : memref<128x256xf32, #tpu.memory_space<vmem>>, vector<32x256xf32>
    %cst_232 = arith.constant dense<0.000000e+00> : vector<8x256xf32>
    %295 = tpu.matmul %293, %294, %cst_232 {dimension_numbers = #tpu.dot_dimension_numbers<[1], [0], [0], [1], [0, 0, 1, 1], [], []>} : vector<8x32xf32>, vector<32x256xf32>, vector<8x256xf32> -> vector<8x256xf32>
    %296 = arith.addf %292, %295 : vector<8x256xf32>
    %c16_233 = arith.constant 16 : index
    %c0_234 = arith.constant 0 : index
    %297 = vector.load %arg6[%c16_233, %c0_234] : memref<32x32xf32, #tpu.memory_space<vmem>>, vector<8x32xf32>
    %c64 = arith.constant 64 : index
    %c0_235 = arith.constant 0 : index
    %298 = vector.load %arg3[%c64, %c0_235] : memref<128x256xf32, #tpu.memory_space<vmem>>, vector<32x256xf32>
    %cst_236 = arith.constant dense<0.000000e+00> : vector<8x256xf32>
    %299 = tpu.matmul %297, %298, %cst_236 {dimension_numbers = #tpu.dot_dimension_numbers<[1], [0], [0], [1], [0, 0, 1, 1], [], []>} : vector<8x32xf32>, vector<32x256xf32>, vector<8x256xf32> -> vector<8x256xf32>
    %300 = arith.addf %296, %299 : vector<8x256xf32>
    %c24_237 = arith.constant 24 : index
    %c0_238 = arith.constant 0 : index
    %301 = vector.load %arg6[%c24_237, %c0_238] : memref<32x32xf32, #tpu.memory_space<vmem>>, vector<8x32xf32>
    %c96 = arith.constant 96 : index
    %c0_239 = arith.constant 0 : index
    %302 = vector.load %arg3[%c96, %c0_239] : memref<128x256xf32, #tpu.memory_space<vmem>>, vector<32x256xf32>
    %cst_240 = arith.constant dense<0.000000e+00> : vector<8x256xf32>
    %303 = tpu.matmul %301, %302, %cst_240 {dimension_numbers = #tpu.dot_dimension_numbers<[1], [0], [0], [1], [0, 0, 1, 1], [], []>} : vector<8x32xf32>, vector<32x256xf32>, vector<8x256xf32> -> vector<8x256xf32>
    %304 = arith.addf %300, %303 : vector<8x256xf32>
    %c0_241 = arith.constant 0 : index
    %c0_242 = arith.constant 0 : index
    %305 = vector.load %arg4[%c0_241, %c0_242] : memref<1x256xf32, #tpu.memory_space<vmem>>, vector<1x256xf32>
    %306 = vector.broadcast %305 : vector<1x256xf32> to vector<8x256xf32>
    %307 = arith.addf %304, %306 : vector<8x256xf32>
    %cst_243 = arith.constant 0.000000e+00 : f32
    %308 = vector.broadcast %cst_243 : f32 to vector<8x256xf32>
    %309 = arith.maximumf %307, %308 : vector<8x256xf32>
    %c0_244 = arith.constant 0 : index
    %c0_245 = arith.constant 0 : index
    %310 = vector.load %arg5[%c0_244, %c0_245] : memref<8x256xf32, #tpu.memory_space<vmem>>, vector<8x256xf32>
    tpu.vector_store %arg5[%c0_244, %c0_245], %309 {strides = array<i32>} : memref<8x256xf32, #tpu.memory_space<vmem>>, vector<8x256xf32>,
    return
  }
  func.func @transform_1(%arg0: i32, %arg1: memref<32xi32, #tpu.memory_space<smem>>) -> (i32, i32) {
    %c0_i32 = arith.constant 0 : i32
    %c0_i32_0 = arith.constant 0 : i32
    %c0_i32_1 = arith.constant 0 : i32
    return %c0_i32, %c0_i32_0 : i32, i32
  }
  func.func @transform_2(%arg0: i32, %arg1: memref<32xi32, #tpu.memory_space<smem>>) -> (i32, i32) {
    %c0_i32 = arith.constant 0 : i32
    %c0_i32_0 = arith.constant 0 : i32
    %c0_i32_1 = arith.constant 0 : i32
    return %c0_i32, %c0_i32_0 : i32, i32
  }
  func.func @transform_3(%arg0: i32, %arg1: memref<32xi32, #tpu.memory_space<smem>>) -> (i32, i32) {
    %c0_i32 = arith.constant 0 : i32
    %c0_i32_0 = arith.constant 0 : i32
    %c0_i32_1 = arith.constant 0 : i32
    return %c0_i32, %c0_i32_0 : i32, i32
  }
}

</mosaic_0001>

<bundles_post_ra>
// kernel: tpu_custom_call.1
= control target key start
LH: loop header
LB: loop body
LE: loop exit
PB: predicated region body
PF: predicated region fallthrough
CT: control target
= control target key end

     0   :  { %s2670_s0 = inlined_call_operand.vmem [shape: s32[32], index: 0, kind: input, shape index: {}]   ;;  %s2671_s1 = inlined_call_operand.vmem [shape: f32[64,32], index: 1, kind: input, shape index: {}]   ;;  %s2672_s2 = inlined_call_operand.hbm [shape: f32[128,256], index: 2, kind: input, shape index: {}]   ;;  %s2673_s3 = inlined_call_operand.vmem [shape: f32[1,256], index: 3, kind: input, shape index: {}]   ;;  %s2674_s4 = inlined_call_operand.hbm [shape: f32[8,256], index: 4, kind: output, shape index: {}]  }
   0x1   :  { %s9_s17 = sshll.u32 %s2670_s0, 4  ;;  %s10_s17 = int_to_ptr.vmem [resolvable:$true] %s9_s17 }
   0x2   :  { %s2441_s18 = scalar_lea.vmem %s10_s17, 16  ;;  %p2446_p1 = scmp.lt.s32.totalorder %s10_s17, %s10_s17 }
   0x3   :  { %p2442_p0 = scmp.ne.s32.totalorder %s10_s17, %s2441_s18  ;;  %p2447_p2 = scmp.lt.s32.totalorder %s2441_s18, %s2441_s18 }
   0x5   :  { %p2448_p3 = por %p2447_p2, %p2446_p1 }
   0x7   :  { %p2449_p4 = pnand %p2448_p3, %p2442_p0 }
   0x9   :  { %2452 = shalt.err (!%p2449_p4)  }
   0xa   :  { %s2505_s19 = smov [#allocation5]  }
   0xb   :  { %12 = dma.vmem_to_smem %s10_s17, 16, %s2505_s19, [#allocation4] }
   0xc   :  { %2497 = dma.done.wait [#allocation4], 16 }
   0xd   :  { %2498 = vsyncadd [#allocation4], 4294967280 }
   0xe   :  { %14 = sfence }
   0xf   :  { %15 = vsyncpa [#allocation7], 0 }
  0x10   :  { %16 = vsyncpa [#allocation8], 0  ;;  %s2506_s20 = smov [#allocation6]   ;;  %s2453_s23 = scalar_lea.hbm %s2672_s2, 4096 }
  0x11   :  { %s22_s21 = sshll.u32 %s2506_s20, 4  ;;  %p2454_p5 = scmp.ne.s32.totalorder %s2672_s2, %s2453_s23  ;;  %s23_s21 = int_to_ptr.vmem [resolvable:$true] %s22_s21 }
  0x12   :  { %p2457_p6 = scmp.lt.u32.totalorder %s2453_s23, %s2672_s2 }
  0x14   :  { %p2459_p7 = pnand %p2457_p6, %p2454_p5 }
  0x16   :  { %2462 = shalt.err (!%p2459_p7)
}
  0x17   :  { %s2463_s28 = scalar_lea.vmem %s23_s21, 4096  ;;  %p2468_p9 = scmp.lt.s32.totalorder %s23_s21, %s23_s21 }
  0x18   :  { %p2464_p8 = scmp.ne.s32.totalorder %s23_s21, %s2463_s28  ;;  %p2469_p10 = scmp.lt.s32.totalorder %s2463_s28, %s2463_s28 }
  0x1a   :  { %p2470_p11 = por %p2469_p10, %p2468_p9 }
  0x1c   :  { %p2471_p12 = pnand %p2470_p11, %p2464_p8 }
  0x1e   :  { %2474 = shalt.err (!%p2471_p12)
}
  0x1f   :  { %s2507_s29 = smov 256   ;;  %s2508_s30 = smov 16  }
  0x20   :  { %28 = dma.hbm_to_vmem [thread:$0]  %s2672_s2, 4096, %s23_s21, [#allocation7], %s2507_s29, %s2507_s29, %s2508_s30  }
  0x21   :  { %2499 = dma.done.wait [#allocation7], 4096  }
  0x22   :  { %2500 = vsyncadd [#allocation7], 4294963200  ;;  %s34_s7 = sld [smem:[#allocation5]] }
  0x28   :  { %s35_s10 = scalar_lea.vmem %s2671_s1, %s34_s7 }
  0x29   :  { %v53_v0 = vld [vmem:[%s35_s10] sm:$0x1] }
  0x2a   :  { %54 = vst [vmem:[#allocation2] sm:$0x1] %v53_v0 }
  0x2b   :  { %79 = vsyncadd [#allocation3], 16  ;;  %s2361_s11 = sld [smem:[#allocation5 + $0x1]] }
  0x31   :  { %s81_s14 = scalar_lea.vmem %s2671_s1, %s2361_s11 }
  0x32   :  { %v100_v1 = vld [vmem:[%s81_s14] sm:$0x1] }
  0x33   :  { %101 = vst [vmem:[#allocation2 + $0x1] sm:$0x1] %v100_v1 }
  0x34   :  { %126 = vsyncadd [#allocation3], 16  ;;  %s2362_s15 = sld [smem:[#allocation5 + $0x2]] }
  0x3a   :  { %s128_s17 = scalar_lea.vmem %s2671_s1, %s2362_s15 }
  0x3b   :  { %v147_v2 = vld [vmem:[%s128_s17] sm:$0x1] }
  0x3c   :  { %148 = vst [vmem:[#allocation2 + $0x2] sm:$0x1] %v147_v2 }
  0x3d   :  { %173 = vsyncadd [#allocation3], 16  ;;  %s2363_s18 = sld [smem:[#allocation5 + $0x3]] }
  0x43   :  { %s175_s21 = scalar_lea.vmem %s2671_s1, %s2363_s18 }
  0x44   :  { %v194_v3 = vld [vmem:[%s175_s21] sm:$0x1] }
  0x45   :  { %195 = vst [vmem:[#allocation2 + $0x3] sm:$0x1] %v194_v3 }
  0x46   :  { %220 = vsyncadd [#allocation3], 16  ;;  %s2364_s22 = sld [smem:[#allocation5 + $0x4]] }
  0x4c   :  { %s222_s24 = scalar_lea.vmem %s2671_s1, %s2364_s22 }
  0x4d   :  { %v241_v4 = vld [vmem:[%s222_s24] sm:$0x1] }
  0x4e   :  { %242 = vst [vmem:[#allocation2 + $0x4] sm:$0x1] %v241_v4 }
  0x4f   :  { %267 = vsyncadd [#allocation3], 16  ;;  %s2365_s25 = sld [smem:[#allocation5 + $0x5]] }
  0x55   :  { %s269_s28 = scalar_lea.vmem %s2671_s1, %s2365_s25 }
  0x56   :  { %v288_v5 = vld [vmem:[%s269_s28] sm:$0x1] }
  0x57   :  { %289 = vst [vmem:[#allocation2 + $0x5] sm:$0x1] %v288_v5 }
  0x58   :  { %314 = vsyncadd [#allocation3], 16  ;;  %s2366_s29 = sld [smem:[#allocation5 + $0x6]] }
  0x5e   :  { %s316_s6 = scalar_lea.vmem %s2671_s1, %s2366_s29 }
  0x5f   :  { %v335_v6 = vld [vmem:[%s316_s6] sm:$0x1] }
  0x60   :  { %336 = vst [vmem:[#allocation2 + $0x6] sm:$0x1] %v335_v6 }
  0x61   :  { %361 = vsyncadd [#allocation3], 16  ;;  %s2367_s7 = sld [smem:[#allocation5 + $0x7]] }
  0x67   :  { %s363_s10 = scalar_lea.vmem %s2671_s1, %s2367_s7 }
  0x68   :  { %v382_v7 = vld [vmem:[%s363_s10] sm:$0x1] }
  0x69   :  { %383 = vst [vmem:[#allocation2 + $0x7] sm:$0x1] %v382_v7 }
  0x6a   :  { %408 = vsyncadd [#allocation3], 16  ;;  %s2368_s11 = sld [smem:[#allocation5 + $0x8]] }
  0x70   :  { %s410_s14 = scalar_lea.vmem %s2671_s1, %s2368_s11 }
  0x71   :  { %v429_v8 = vld [vmem:[%s410_s14] sm:$0x1] }
  0x72   :  { %430 = vst [vmem:[#allocation2 + $0x8] sm:$0x1] %v429_v8 }
  0x73   :  { %455 = vsyncadd [#allocation3], 16  ;;  %s2369_s15 = sld [smem:[#allocation5 + $0x9]] }
  0x79   :  { %s457_s17 = scalar_lea.vmem %s2671_s1, %s2369_s15 }
  0x7a   :  { %v476_v9 = vld [vmem:[%s457_s17] sm:$0x1] }
  0x7b   :  { %477 = vst [vmem:[#allocation2 + $0x9] sm:$0x1] %v476_v9 }
  0x7c   :  { %502 = vsyncadd [#allocation3], 16  ;;  %s2370_s18 = sld [smem:[#allocation5 + $0xa]] }
  0x82   :  { %s504_s21 = scalar_lea.vmem %s2671_s1, %s2370_s18 }
  0x83   :  { %v523_v10 = vld [vmem:[%s504_s21] sm:$0x1] }
  0x84   :  { %524 = vst [vmem:[#allocation2 + $0xa] sm:$0x1] %v523_v10 }
  0x85   :  { %549 = vsyncadd [#allocation3], 16  ;;  %s2371_s22 = sld [smem:[#allocation5 + $0xb]] }
  0x8b   :  { %s551_s24 = scalar_lea.vmem %s2671_s1, %s2371_s22 }
  0x8c   :  { %v570_v11 = vld [vmem:[%s551_s24] sm:$0x1] }
  0x8d   :  { %571 = vst [vmem:[#allocation2 + $0xb] sm:$0x1] %v570_v11 }
  0x8e   :  { %596 = vsyncadd [#allocation3], 16  ;;  %s2372_s25 = sld [smem:[#allocation5 + $0xc]] }
  0x94   :  { %s598_s28 = scalar_lea.vmem %s2671_s1, %s2372_s25 }
  0x95   :  { %v617_v12 = vld [vmem:[%s598_s28] sm:$0x1] }
  0x96   :  { %618 = vst [vmem:[#allocation2 + $0xc] sm:$0x1] %v617_v12 }
  0x97   :  { %643 = vsyncadd [#allocation3], 16  ;;  %s2373_s29 = sld [smem:[#allocation5 + $0xd]] }
  0x9d   :  { %s645_s6 = scalar_lea.vmem %s2671_s1, %s2373_s29 }
  0x9e   :  { %v664_v13 = vld [vmem:[%s645_s6] sm:$0x1] }
  0x9f   :  { %665 = vst [vmem:[#allocation2 + $0xd] sm:$0x1] %v664_v13 }
  0xa0   :  { %690 = vsyncadd [#allocation3], 16  ;;  %s2374_s7 = sld [smem:[#allocation5 + $0xe]] }
  0xa6   :  { %s692_s10 = scalar_lea.vmem %s2671_s1, %s2374_s7 }
  0xa7   :  { %v711_v14 = vld [vmem:[%s692_s10] sm:$0x1] }
  0xa8   :  { %712 = vst [vmem:[#allocation2 + $0xe] sm:$0x1] %v711_v14 }
  0xa9   :  { %737 = vsyncadd [#allocation3], 16  ;;  %s2375_s11 = sld [smem:[#allocation5 + $0xf]] }
  0xaf   :  { %s739_s14 = scalar_lea.vmem %s2671_s1, %s2375_s11 }
  0xb0   :  { %v758_v15 = vld [vmem:[%s739_s14] sm:$0x1] }
  0xb1   :  { %759 = vst [vmem:[#allocation2 + $0xf] sm:$0x1] %v758_v15 }
  0xb2   :  { %784 = vsyncadd [#allocation3], 16  ;;  %s2376_s15 = sld [smem:[#allocation5 + $0x10]] }
  0xb8   :  { %s786_s17 = scalar_lea.vmem %s2671_s1, %s2376_s15 }
  0xb9   :  { %v805_v16 = vld [vmem:[%s786_s17] sm:$0x1] }
  0xba   :  { %806 = vst [vmem:[#allocation2 + $0x10] sm:$0x1] %v805_v16 }
  0xbb   :  { %831 = vsyncadd [#allocation3], 16  ;;  %s2377_s18 = sld [smem:[#allocation5 + $0x11]] }
  0xc1   :  { %s833_s21 = scalar_lea.vmem %s2671_s1, %s2377_s18 }
  0xc2   :  { %v852_v17 = vld [vmem:[%s833_s21] sm:$0x1] }
  0xc3   :  { %853 = vst [vmem:[#allocation2 + $0x11] sm:$0x1] %v852_v17 }
  0xc4   :  { %878 = vsyncadd [#allocation3], 16  ;;  %s2378_s22 = sld [smem:[#allocation5 + $0x12]] }
  0xca   :  { %s880_s24 = scalar_lea.vmem %s2671_s1, %s2378_s22 }
  0xcb   :  { %v899_v18 = vld [vmem:[%s880_s24] sm:$0x1] }
  0xcc   :  { %900 = vst [vmem:[#allocation2 + $0x12] sm:$0x1] %v899_v18 }
  0xcd   :  { %925 = vsyncadd [#allocation3], 16  ;;  %s2379_s25 = sld [smem:[#allocation5 + $0x13]] }
  0xd3   :  { %s927_s28 = scalar_lea.vmem %s2671_s1, %s2379_s25 }
  0xd4   :  { %v946_v19 = vld [vmem:[%s927_s28] sm:$0x1] }
  0xd5   :  { %947 = vst [vmem:[#allocation2 + $0x13] sm:$0x1] %v946_v19 }
  0xd6   :  { %972 = vsyncadd [#allocation3], 16  ;;  %s2380_s29 = sld [smem:[#allocation5 + $0x14]] }
  0xdc   :  { %s974_s6 = scalar_lea.vmem %s2671_s1, %s2380_s29 }
  0xdd   :  { %v993_v20 = vld [vmem:[%s974_s6] sm:$0x1] }
  0xde   :  { %994 = vst [vmem:[#allocation2 + $0x14] sm:$0x1] %v993_v20 }
  0xdf   :  { %1019 = vsyncadd [#allocation3], 16  ;;  %s2381_s7 = sld [smem:[#allocation5 + $0x15]] }
  0xe5   :  { %s1021_s10 = scalar_lea.vmem %s2671_s1, %s2381_s7 }
  0xe6   :  { %v1040_v21 = vld [vmem:[%s1021_s10] sm:$0x1] }
  0xe7   :  { %1041 = vst [vmem:[#allocation2 + $0x15] sm:$0x1] %v1040_v21 }
  0xe8   :  { %1066 = vsyncadd [#allocation3], 16  ;;  %s2382_s11 = sld [smem:[#allocation5 + $0x16]] }
  0xee   :  { %s1068_s14 = scalar_lea.vmem %s2671_s1, %s2382_s11 }
  0xef   :  { %v1087_v22 = vld [vmem:[%s1068_s14] sm:$0x1] }
  0xf0   :  { %1088 = vst [vmem:[#allocation2 + $0x16] sm:$0x1] %v1087_v22 }
  0xf1   :  { %1113 = vsyncadd [#allocation3], 16  ;;  %s2383_s15 = sld [smem:[#allocation5 + $0x17]] }
  0xf7   :  { %s1115_s17 = scalar_lea.vmem %s2671_s1, %s2383_s15 }
  0xf8   :  { %v1134_v23 = vld [vmem:[%s1115_s17] sm:$0x1] }
  0xf9   :  { %1135 = vst [vmem:[#allocation2 + $0x17] sm:$0x1] %v1134_v23 }
  0xfa   :  { %1160 = vsyncadd [#allocation3], 16  ;;  %s2384_s18 = sld [smem:[#allocation5 + $0x18]] }
 0x100   :  { %s1162_s21 = scalar_lea.vmem %s2671_s1, %s2384_s18 }
 0x101   :  { %v1181_v24 = vld [vmem:[%s1162_s21] sm:$0x1] }
 0x102   :  { %1182 = vst [vmem:[#allocation2 + $0x18] sm:$0x1] %v1181_v24 }
 0x103   :  { %1207 = vsyncadd [#allocation3], 16  ;;  %s2385_s22 = sld [smem:[#allocation5 + $0x19]] }
 0x109   :  { %s1209_s24 = scalar_lea.vmem %s2671_s1, %s2385_s22 }
 0x10a   :  { %v1228_v25 = vld [vmem:[%s1209_s24] sm:$0x1] }
 0x10b   :  { %1229 = vst [vmem:[#allocation2 + $0x19] sm:$0x1] %v1228_v25 }
 0x10c   :  { %1254 = vsyncadd [#allocation3], 16  ;;  %s2386_s25 = sld [smem:[#allocation5 + $0x1a]] }
 0x112   :  { %s1256_s28 = scalar_lea.vmem %s2671_s1, %s2386_s25 }
 0x113   :  { %v1275_v26 = vld [vmem:[%s1256_s28] sm:$0x1] }
 0x114   :  { %1276 = vst [vmem:[#allocation2 + $0x1a] sm:$0x1] %v1275_v26 }
 0x115   :  { %1301 = vsyncadd [#allocation3], 16  ;;  %s2387_s29 = sld [smem:[#allocation5 + $0x1b]] }
 0x11b   :  { %s1303_s6 = scalar_lea.vmem %s2671_s1, %s2387_s29 }
 0x11c   :  { %v1322_v27 = vld [vmem:[%s1303_s6] sm:$0x1] }
 0x11d   :  { %1323 = vst [vmem:[#allocation2 + $0x1b] sm:$0x1] %v1322_v27 }
 0x11e   :  { %1348 = vsyncadd [#allocation3], 16  ;;  %s2388_s7 = sld [smem:[#allocation5 + $0x1c]] }
 0x124   :  { %s1350_s10 = scalar_lea.vmem %s2671_s1, %s2388_s7 }
 0x125   :  { %v1369_v28 = vld [vmem:[%s1350_s10] sm:$0x1] }
 0x126   :  { %1370 = vst [vmem:[#allocation2 + $0x1c] sm:$0x1] %v1369_v28 }
 0x127   :  { %1395 = vsyncadd [#allocation3], 16  ;;  %s2389_s11 = sld [smem:[#allocation5 + $0x1d]] }
 0x12d   :  { %s1397_s14 = scalar_lea.vmem %s2671_s1, %s2389_s11 }
 0x12e   :  { %v1416_v29 = vld [vmem:[%s1397_s14] sm:$0x1] }
 0x12f   :  { %1417 = vst [vmem:[#allocation2 + $0x1d] sm:$0x1] %v1416_v29 }
 0x130   :  { %1442 = vsyncadd [#allocation3], 16  ;;  %s2390_s15 = sld [smem:[#allocation5 + $0x1e]] }
 0x136   :  { %s1444_s17 = scalar_lea.vmem %s2671_s1, %s2390_s15 }
 0x137   :  { %v1463_v30 = vld [vmem:[%s1444_s17] sm:$0x1] }
 0x138   :  { %1464 = vst [vmem:[#allocation2 + $0x1e] sm:$0x1] %v1463_v30 }
 0x139   :  { %1489 = vsyncadd [#allocation3], 16  ;;  %s2391_s18 = sld [smem:[#allocation5 + $0x1f]] }
 0x13f   :  { %s1491_s21 = scalar_lea.vmem %s2671_s1, %s2391_s18 }
 0x140   :  { %v1510_v31 = vld [vmem:[%s1491_s21] sm:$0x1] }
 0x141   :  { %1511 = vst [vmem:[#allocation2 + $0x1f] sm:$0x1] %v1510_v31 }
 0x142   :  { %1536 = vsyncadd [#allocation3], 16 }
 0x143   :  { %2501 = dma.done.wait [#allocation3], 512 }
 0x144   :  { %2502 = vsyncadd [#allocation3], 4294966784  ;;  %v2509_v32 = vmov 0.0   ;;  %v1613_v33 = vld [vmem:[#allocation6 + $0x48] sm:$0xff]  ;;  %v1615_v34 = vld [vmem:[#allocation6 + $0x58] sm:$0xff]  ;;  %vm1620_vm0 = vcmask 261120   ;;  %v1941_v21 = vlaneseq }
 0x145   :  { %1688 = vmatprep.mubr.f32.mxu1 %v2509_v32  ;;  %1845 = vmatprep.mubr.f32.mxu0 %v2509_v32  ;;  %v1771_v35 = vld [vmem:[#allocation6 + $0x88] sm:$0xff]  ;;  %v2397_v36 = vpack.c.bf16 %v1615_v34, %v1613_v33  ;;  %v1773_v37 = vld [vmem:[#allocation6 + $0x98] sm:$0xff]  ;;  %v1612_v38 = vld [vmem:[#allocation6 + $0x40] sm:$0xff]  ;;  %s2510_s0 = smov [#allocation9]  }
 0x146   :  { %v1614_v39 = vld [vmem:[#allocation6 + $0x50] sm:$0xff]  ;;  %v2413_v40 = vpack.c.bf16 %v1773_v37, %v1771_v35  ;;  %v1770_v42 = vld [vmem:[#allocation6 + $0x80] sm:$0xff]  ;;  %v1617_v44 = vld [vmem:[#allocation6 + $0x68] sm:$0xff]  ;;  %v1942_v22 = vshrl.u32 %v1941_v21, 7  ;;  %s1963_s23 = sshll.u32 %s2510_s0, 4  ;;  %s1964_s23 = int_to_ptr.vmem [resolvable:$true] %s1963_s23 }
 0x147   :  { %v2399_v41 = vpack.c.bf16 %v1614_v39, %v1612_v38  ;;  %v1772_v43 = vld [vmem:[#allocation6 + $0x90] sm:$0xff]  ;;  %2398 = vmatprep.subr.bf16.mxu1 %v2397_v36  ;;  %v1619_v46 = vld [vmem:[#allocation6 + $0x78] sm:$0xff]  ;;  %v1775_v47 = vld [vmem:[#allocation6 + $0xa8] sm:$0xff]  ;;  %s2475_s24 = scalar_lea.vmem %s1964_s23, 256  ;;  %p2480_p0 = scmp.lt.s32.totalorder %s1964_s23, %s1964_s23 }
 0x148   :  { %v2415_v45 = vpack.c.bf16 %v1772_v43, %v1770_v42  ;;  %v1777_v48 = vld [vmem:[#allocation6 + $0xb8] sm:$0xff]  ;;  %2414 = vmatprep.subr.bf16.mxu0 %v2413_v40  ;;  %v2401_v49 = vpack.c.bf16 %v1619_v46, %v1617_v44  ;;  %v1616_v51 = vld [vmem:[#allocation6 + $0x60] sm:$0xff]  ;;  %v1618_v52 = vld [vmem:[#allocation6 + $0x70] sm:$0xff]  ;;  %v1943_v23 = vsub.s32 0, %v1942_v22  ;;  %v1947_v25 = vsub.s32 1, %v1942_v22  ;;  %p2476_p13 = scmp.ne.s32.totalorder %s1964_s23, %s2475_s24  ;;  %p2481_p1 = scmp.lt.s32.totalorder %s2475_s24, %s2475_s24 }
 0x149   :  { %2400 = vmatpush1.bf16.msra.mxu1 %v2399_v41  ;;  %v2417_v50 = vpack.c.bf16 %v1777_v48, %v1775_v47  ;;  %v1774_v53 = vld [vmem:[#allocation6 + $0xa0] sm:$0xff]  ;;  %v2403_v54 = vpack.c.bf16 %v1618_v52, %v1616_v51  ;;  %v1776_v55 = vld [vmem:[#allocation6 + $0xb0] sm:$0xff]  ;;  %v1604_v56 = vld [vmem:[#allocation6 + $0x8] sm:$0xff] }
 0x14a   :  { %2416 = vmatpush1.bf16.msra.mxu0 %v2415_v45  ;;  %2402 = vmatprep.subr.bf16.mxu1 %v2401_v49  ;;  %v2419_v57 = vpack.c.bf16 %v1776_v55, %v1774_v53  ;;  %v1611_v58 = vld [vmem:[#allocation2 + $0x8] sm:$0xff]  ;;  %v1606_v59 = vld [vmem:[#allocation6 + $0x18] sm:$0xff]  ;;  %v1769_v62 = vld [vmem:[#allocation2 + $0x10] sm:$0xff]  ;;  %p2482_p2 = por %p2481_p1, %p2480_p0 }
 0x14b   :  { %2418 = vmatprep.subr.bf16.mxu0 %v2417_v50  ;;  %v1856_v60 = vld [vmem:[#allocation6 + $0xc8] sm:$0xff]  ;;  %v2405_v61 = vpack.c.bf16 %v1606_v59, %v1604_v56  ;;  %v1858_v63 = vld [vmem:[#allocation6 + $0xd8] sm:$0xff]  ;;  %v1603_v0 = vld [vmem:[#allocation6] sm:$0xff] }
 0x14c   :  { %v1605_v1 = vld [vmem:[#allocation6 + $0x10] sm:$0xff]  ;;  %v2421_v2 = vpack.c.bf16 %v1858_v63, %v1856_v60  ;;  %v1855_v4 = vld [vmem:[#allocation6 + $0xc0] sm:$0xff]  ;;  %v1608_v6 = vld [vmem:[#allocation6 + $0x28] sm:$0xff]  ;;  %p2483_p3 = pnand %p2482_p2, %p2476_p13 }
 0x14d   :  { %2404 = vmatpush1.bf16.msra.mxu1 %v2403_v54  ;;  %v2407_v3 = vpack.c.bf16 %v1605_v1, %v1603_v0  ;;  %v1857_v5 = vld [vmem:[#allocation6 + $0xd0] sm:$0xff]  ;;  %v1610_v8 = vld [vmem:[#allocation6 + $0x38] sm:$0xff]  ;;  %v1860_v9 = vld [vmem:[#allocation6 + $0xe8] sm:$0xff] }
 0x14e   :  { %2420 = vmatpush1.bf16.msra.mxu0 %v2419_v57  ;;  %2406 = vmatprep.subr.bf16.mxu1 %v2405_v61  ;;  %v2423_v7 = vpack.c.bf16 %v1857_v5, %v1855_v4  ;;  %v1862_v10 = vld [vmem:[#allocation6 + $0xf8] sm:$0xff]  ;;  %v2409_v11 = vpack.c.bf16 %v1610_v8, %v1608_v6  ;;  %v1607_v13 = vld [vmem:[#allocation6 + $0x20] sm:$0xff]  ;;  %v1609_v14 = vld [vmem:[#allocation6 + $0x30] sm:$0xff] }
 0x14f   :  { %2422 = vmatprep.subr.bf16.mxu0 %v2421_v2  ;;  %v2425_v12 = vpack.c.bf16 %v1862_v10, %v1860_v9  ;;  %v1859_v15 = vld [vmem:[#allocation6 + $0xe0] sm:$0xff]  ;;  %v1861_v16 = vld [vmem:[#allocation6 + $0xf0] sm:$0xff]  ;;  %v2411_v17 = vpack.c.bf16 %v1609_v14, %v1607_v13  ;;  %v1854_v20 = vld [vmem:[#allocation2 + $0x18] sm:$0xff] }
 0x150   :  { %2392 = vmatmul.mubr.msk.f32.vlgmr.msra.gmra.mrb[0].mxu1 %vm1620_vm0, %v1611_v58  ;;  %v2427_v18 = vpack.c.bf16 %v1861_v16, %v1859_v15  ;;  %v1602_v19 = vld [vmem:[#allocation2] sm:$0xff] }
 0x151   :  { %2394 = vmatmul.mubr.msk.f32.vlgmr.msra.gmra.mrb[0].mxu0 %vm1620_vm0, %v1769_v62  ;;  %2408 = vmatpush1.bf16.msra.mxu1 %v2407_v3  ;;  %v1939_v24 = vld [vmem:[%s2673_s3] sm:$0x3] }
 0x152   :  { %2424 = vmatpush1.bf16.msra.mxu0 %v2423_v7  ;;  %2410 = vmatprep.subr.bf16.mxu1 %v2409_v11  ;;  %v1944_v27 = vrot.slane %v1939_v24, %v1943_v23  ;;  %v1948_v30 = vrot.slane %v1939_v24, %v1947_v25 }
 0x153   :  { %2426 = vmatprep.subr.bf16.mxu0 %v2425_v12  ;;  %1762 = vmatprep.mubr.f32.mxu1 %v2509_v32 }
 0x154   :  { %1930 = vmatprep.mubr.f32.mxu0 %v2509_v32 }
 0x155   :  { %2412 = vmatpush1.bf16.msra.mxu1 %v2411_v17 }
 0x156   :  { %2428 = vmatpush1.bf16.msra.mxu0 %v2427_v18 }
 0x158   :  { %2393 = vmatmul.mubr.msk.f32.vlgmr.msra.gmra.mrb[0].mxu1 %vm1620_vm0, %v1602_v19 }
 0x159   :  { %2395 = vmatmul.mubr.msk.f32.vlgmr.msra.gmra.mrb[0].mxu0 %vm1620_vm0, %v1854_v20 }
 0x22b   :  { %v1764_v26 = vpop.f32.mrb[0].mxu1 }
 0x22c   :  { %v1932_v28 = vpop.f32.mrb[0].mxu0  ;;  %v1766_v29 = vpop.f32.mrb[1].mxu1 }
 0x22d   :  { %v2429_v31 = vadd.f32 %v1932_v28, %v1764_v26  ;;  %v1934_v32 = vpop.f32.mrb[1].mxu0 }
 0x22e   :  { %v2430_v33 = vadd.f32 %v1934_v32, %v1766_v29 }
 0x22f   :  { %v1951_v34 = vadd.f32 %v2429_v31, %v1944_v27 }
 0x230   :  { %v1952_v35 = vadd.f32 %v2430_v33, %v1948_v30 }
 0x231   :  { %v1953_v36 = vmax.f32 %v1951_v34, 0.0 }
 0x232   :  { %v1954_v37 = vmax.f32 %v1952_v35, 0.0 }
 0x233   :  { %1955 = vst [vmem:[#allocation9] sm:$0xff] %v1953_v36 }
 0x234   :  { %1956 = vst [vmem:[#allocation9 + $0x8] sm:$0xff] %v1954_v37 }
 0x235   :  { %2486 = shalt.err (!%p2483_p3)
}
 0x236   :  { %s2487_s26 = scalar_lea.hbm %s2674_s4, 256 }
 0x237   :  { %p2488_p4 = scmp.ne.s32.totalorder %s2674_s4, %s2487_s26  ;;  %p2491_p5 = scmp.lt.u32.totalorder %s2487_s26, %s2674_s4 }
 0x239   :  { %p2493_p6 = pnand %p2491_p5, %p2488_p4 }
 0x23b   :  { %2496 = shalt.err (!%p2493_p6)
}
 0x23c   :  { %1966 = dma.vmem_to_hbm [thread:$0]  %s1964_s23, 256, %s2674_s4, [#allocation8]  }
 0x23d   :  { %2503 = dma.done.wait [#allocation8], 256  }
 0x23e   :  { %2504 = vsyncadd [#allocation8], 4294967040 }
 0x23f   :  { %1970 = vsyncpa [#allocation7], 1 }
 0x240   :  { %1971 = vsyncpa [#allocation8], 1 }
 0x241   :  { %1972 = vsyncmov [#allocation3] }
 0x244   :  { %s1973_s7 = vpop.sfrf %1972 }
 0x245   :  { %p2396_p7 = scmp.ne.s32.totalorder %s1973_s7, 0 }
 0x247   :  { %1977 = shalt.err (%p2396_p7)  }

</bundles_post_ra>
